<compile_context>
chip_gen: v5e
topology: v5e:2x2
jax: 0.10.0
libtpu: 0.0.40
codegen_flags: <defaults>
</compile_context>

<pallas_src>
import functools

import jax
import jax.numpy as jnp
import numpy as np
from jax import lax
from jax.experimental import pallas as pl
from jax.experimental.pallas import tpu as pltpu


def _round_up(x, m):
    return ((x + m - 1) // m) * m


def cpah_kernel(x_ref, wm_ref, bm_ref, w13_ref, b13_ref, w24_ref, wcp_ref,
                bpk_ref, mc_ref, small_ref, *, label_dim):
    x_bf = x_ref[...]                                # (TM, H) bf16
    x = x_bf.astype(jnp.float32)                     # f32 for element-wise math

    # mask module: Conv1d(1,H,(H,1)) on unsqueezed input == x @ Wm + bm, then sigmoid
    mc = jax.nn.sigmoid(
        jnp.dot(x_bf, wm_ref[...], preferred_element_type=jnp.float32)
        + bm_ref[...])                               # (TM, H) f32

    frc = x * mc                                     # consistent features
    frp = x - frc                                    # private features (= x*(1-mc))

    # fused first layers of feature_dis & consistency_dis (shared LHS = frc),
    # lane-padded to a multiple of 128
    h13 = jnp.maximum(
        jnp.dot(frc.astype(jnp.bfloat16), w13_ref[...],
                preferred_element_type=jnp.float32) + b13_ref[...],
        0.0)                                         # (TM, H13P)

    # fused second layers (block-diag, lane-padded) + classifier, one lane-dense
    # packed output: lanes [0:1]=feature_dis, [1:4]=consistency_dis,
    # [4:4+L]=classifier (sigmoid applied below), rest zero.
    packed = (jnp.dot(h13.astype(jnp.bfloat16), w24_ref[...],
                      preferred_element_type=jnp.float32)
              + jnp.dot(frp.astype(jnp.bfloat16), wcp_ref[...],
                        preferred_element_type=jnp.float32)
              + bpk_ref[...])                        # (TM, PACK)

    lane = lax.broadcasted_iota(jnp.int32, packed.shape, 1)
    is_label = (lane >= 4) & (lane < 4 + label_dim)
    packed = jnp.where(is_label, jax.nn.sigmoid(packed), packed)

    mc_ref[...] = mc.astype(mc_ref.dtype)            # bf16 writeback
    small_ref[...] = packed


def _vmem_limit_bytes(TM, H, H13P, PACK, weight_bufs):
    """Working-set based scoped-VMEM limit (bytes), clamped to [16, 64] MiB."""
    bf2, f4 = 2, 4
    io = 2 * (TM * H * bf2)            # x tile (bf16), double-buffered
    io += 2 * (TM * H * bf2)           # mc out tile (bf16)
    io += 2 * (TM * PACK * f4)         # packed out tile (f32)
    w = (H * H * bf2 + H * f4 +
         H * H13P * bf2 + H13P * f4 +
         H13P * PACK * bf2 + H * PACK * bf2 + PACK * f4) * weight_bufs
    work = io + w
    # 2x headroom for f32 intermediates / compiler scratch.
    return int(min(64 << 20, max(16 << 20, 2 * work + (1 << 20))))


def _make_call(B_pad, TM, H, H13P, PACK, label_dim, single_buffer_weights):
    """Build the pallas_call; weights optionally single-buffered."""

    def wspec(shape, imap):
        if single_buffer_weights:
            # These blocks are constant over the batch axis (only switch at the
            # modality boundary): one VMEM buffer is enough.
            return pl.BlockSpec(shape, imap, pipeline_mode=pl.Buffered(1))
        return pl.BlockSpec(shape, imap)

    kernel = functools.partial(cpah_kernel, label_dim=label_dim)
    grid = (2, B_pad // TM)   # (modality, batch tile) — both independent

    return pl.pallas_call(
        kernel,
        out_shape=(jax.ShapeDtypeStruct((2, B_pad, H), jnp.bfloat16),
                   jax.ShapeDtypeStruct((2, B_pad, PACK), jnp.float32)),
        grid_spec=pltpu.PrefetchScalarGridSpec(
            num_scalar_prefetch=0,
            grid=grid,
            in_specs=[
                pl.BlockSpec((None, TM, H), lambda m, i: (m, i, 0)),       # x (bf16)
                wspec((None, H, H), lambda m, i: (m, 0, 0)),               # mask W (per mod)
                wspec((None, 1, H), lambda m, i: (m, 0, 0)),               # mask b (per mod)
                wspec((H, H13P), lambda m, i: (0, 0)),                     # [w1|w3] shared
                wspec((1, H13P), lambda m, i: (0, 0)),                     # [b1|b3] shared
                wspec((H13P, PACK), lambda m, i: (0, 0)),                  # blockdiag(w2,w4)
                wspec((None, H, PACK), lambda m, i: (m, 0, 0)),            # classifier W pad
                wspec((None, 1, PACK), lambda m, i: (m, 0, 0)),            # packed biases
            ],
            out_specs=[
                pl.BlockSpec((None, TM, H), lambda m, i: (m, i, 0)),       # mc (bf16)
                pl.BlockSpec((None, TM, PACK), lambda m, i: (m, i, 0)),    # packed small
            ],
        ),
        compiler_params=pltpu.CompilerParams(
            # modality axis megacore-sharded on v7x; batch tiles independent.
            dimension_semantics=("parallel", "parallel"),
            vmem_limit_bytes=_vmem_limit_bytes(
                TM, H, H13P, PACK, 1 if single_buffer_weights else 2)),
    )


def cpah_forward(x_img, x_txt, kp):
    """Fused CPAH forward for both modalities in one pallas_call.

    x_img, x_txt: (B, hidden_dim) float32
    kp: kernel-ready packed params from pack_kernel_params().
    Returns dict: outs[mod] = {mc, f_rc, f_rp, feature_dis, consistency_dis, label}
    """
    B, H = x_img.shape
    L = kp["label_dim"]
    PACK = kp["bpk"].shape[-1]
    H13P = kp["w13"].shape[-1]

    # Fill the 256-wide MXU on v6e/v7x; weights are single-buffered so the
    # larger batch tile fits the VMEM budget.
    TM = min(256, _round_up(B, 8))
    B_pad = _round_up(B, TM)

    # bf16 cast folded into the stack; pad only when needed.
    x = jnp.stack([x_img.astype(jnp.bfloat16), x_txt.astype(jnp.bfloat16)])  # (2, B, H)
    if B_pad != B:
        x = jnp.pad(x, ((0, 0), (0, B_pad - B), (0, 0)))

    args = (x, kp["wm"], kp["bm"], kp["w13"], kp["b13"], kp["w24"],
            kp["wcp"], kp["bpk"])
    try:
        out = _make_call(B_pad, TM, H, H13P, PACK, L, True)(*args)
        out = jax.block_until_ready(out)
    except Exception:
        # Fallback for JAX versions that reject pipeline_mode=pl.Buffered(1):
        # identical semantics, default (double) buffering.
        out = _make_call(B_pad, TM, H, H13P, PACK, L, False)(*args)
    mc_all, small_all = out

    outs = {}
    for mi, (mod, xm) in enumerate((("img", x_img), ("txt", x_txt))):
        mc = mc_all[mi, :B].astype(jnp.float32)
        small = small_all[mi, :B]
        frc = xm * mc
        frp = xm - frc
        outs[mod] = dict(
            mc=mc,
            f_rc=frc,
            f_rp=frp,
            feature_dis=small[:, 0:1],
            consistency_dis=small[:, 1:4],
            label=small[:, 4:4 + L],
        )
    return outs


def init_cpah_params(key, hidden_dim, label_dim):
    """PyTorch-shaped synthetic parameters (Linear weights are (out, in))."""
    H, H8, L = hidden_dim, hidden_dim // 8, label_dim
    ks = iter(jax.random.split(key, 24))

    def w(shape):
        return jax.random.normal(next(ks), shape, jnp.float32) * 0.1

    shared = dict(
        fd_w1=w((H8, H)), fd_b1=w((H8,)),
        fd_w2=w((1, H8)), fd_b2=w((1,)),
        cd_w1=w((H8, H)), cd_b1=w((H8,)),
        cd_w2=w((3, H8)), cd_b2=w((3,)),
    )
    per_mod = {}
    for mod in ("img", "txt"):
        per_mod[mod] = dict(
            conv_w=w((H, 1, H, 1)),   # Conv1d(1, H, kernel=(H,1)) weight
            conv_b=w((H,)),
            cls_w=w((L, H)),
            cls_b=w((L,)),
        )
    return shared, per_mod


def pack_kernel_params(shared, per_mod, hidden_dim, label_dim):
    """Collapse / transpose / fuse PyTorch-shaped params into kernel layout."""
    H, H8, L = hidden_dim, hidden_dim // 8, label_dim
    PACK = _round_up(4 + L, 128)
    H13P = _round_up(2 * H8, 128)   # lane-dense fused first-layer width
    mods = ("img", "txt")

    # mask conv (H,1,H,1) -> (H_out,H_in) -> transpose to (H_in,H_out)
    wm = jnp.stack([jnp.transpose(per_mod[m]["conv_w"][:, 0, :, 0]) for m in mods])
    bm = jnp.stack([per_mod[m]["conv_b"].reshape(1, H) for m in mods])

    # fused discriminator first layers, lane-padded with zeros
    w13 = jnp.zeros((H, H13P), jnp.float32)
    w13 = w13.at[:, :H8].set(shared["fd_w1"].T)
    w13 = w13.at[:, H8:2 * H8].set(shared["cd_w1"].T)
    b13 = jnp.zeros((1, H13P), jnp.float32)
    b13 = b13.at[0, :H8].set(shared["fd_b1"])
    b13 = b13.at[0, H8:2 * H8].set(shared["cd_b1"])

    # fused second layers: block-diag(w2, w4) lane-padded to PACK, rows to H13P
    w24 = jnp.zeros((H13P, PACK), jnp.float32)
    w24 = w24.at[:H8, 0:1].set(shared["fd_w2"].T)
    w24 = w24.at[H8:2 * H8, 1:4].set(shared["cd_w2"].T)

    # classifier weight / packed biases, lane-aligned to the output layout
    wcp_list, bpk_list = [], []
    for m in mods:
        wcp = jnp.zeros((H, PACK), jnp.float32)
        wcp = wcp.at[:, 4:4 + L].set(per_mod[m]["cls_w"].T)
        bpk = jnp.zeros((1, PACK), jnp.float32)
        bpk = bpk.at[0, 0:1].set(shared["fd_b2"])
        bpk = bpk.at[0, 1:4].set(shared["cd_b2"])
        bpk = bpk.at[0, 4:4 + L].set(per_mod[m]["cls_b"])
        wcp_list.append(wcp)
        bpk_list.append(bpk)

    return dict(
        label_dim=L,
        wm=wm.astype(jnp.bfloat16),
        bm=bm,
        w13=w13.astype(jnp.bfloat16),
        b13=b13,
        w24=w24.astype(jnp.bfloat16),
        wcp=jnp.stack(wcp_list).astype(jnp.bfloat16),
        bpk=jnp.stack(bpk_list),
    )


def reference_forward(x, shared, mp):
    """Pure-JAX f32 reference of the reconstructed CPAH forward."""
    wm = mp["conv_w"][:, 0, :, 0]                            # (H_out, H_in)
    mc = jax.nn.sigmoid(x @ wm.T + mp["conv_b"])
    frc = x * mc
    frp = x * (1.0 - mc)
    h1 = jax.nn.relu(frc @ shared["fd_w1"].T + shared["fd_b1"])
    dfeat = h1 @ shared["fd_w2"].T + shared["fd_b2"]
    h3 = jax.nn.relu(frc @ shared["cd_w1"].T + shared["cd_b1"])
    dcons = h3 @ shared["cd_w2"].T + shared["cd_b2"]
    lab = jax.nn.sigmoid(frp @ mp["cls_w"].T + mp["cls_b"])
    return mc, frc, frp, dfeat, dcons, lab


if __name__ == "__main__":
    batch = 8
    image_dim, text_dim = 64, 48   # stored attrs in the module; unused by these sub-modules
    hidden_dim = 32
    hash_dim = 16                  # stored attr; no hash_module in this variant
    label_dim = 8

    key = jax.random.PRNGKey(0)
    k_img, k_txt, k_par = jax.random.split(key, 3)

    x_img = jax.random.normal(k_img, (batch, hidden_dim), jnp.float32)
    x_txt = jax.random.normal(k_txt, (batch, hidden_dim), jnp.float32)

    shared, per_mod = init_cpah_params(k_par, hidden_dim, label_dim)
    kp = pack_kernel_params(shared, per_mod, hidden_dim, label_dim)

    outs = jax.block_until_ready(cpah_forward(x_img, x_txt, kp))

    # Correctness vs pure-JAX f32 reference (kernel uses bf16 matmul operands
    # and bf16 x/mc streaming, f32 accumulation -> loose tolerance).
    for mod, x in (("img", x_img), ("txt", x_txt)):
        mc, frc, frp, dfeat, dcons, lab = reference_forward(x, shared, per_mod[mod])
        o = outs[mod]
        checks = ((o["mc"], mc), (o["f_rc"], frc), (o["f_rp"], frp),
                  (o["feature_dis"], dfeat), (o["consistency_dis"], dcons),
                  (o["label"], lab))
        for got, want in checks:
            np.testing.assert_allclose(np.asarray(got), np.asarray(want),
                                       rtol=5e-2, atol=5e-2)

    # Shape sanity checks.
    for mod in ("img", "txt"):
        o = outs[mod]
        assert o["mc"].shape == (batch, hidden_dim)
        assert o["f_rc"].shape == (batch, hidden_dim)
        assert o["f_rp"].shape == (batch, hidden_dim)
        assert o["feature_dis"].shape == (batch, 1)
        assert o["consistency_dis"].shape == (batch, 3)
        assert o["label"].shape == (batch, label_dim)

    print("KERNEL_OK")
</pallas_src>

<mosaic_0001>
module attributes {stable_mosaic.version = 11 : i64} {
  func.func @cpah_kernel(%arg0: i32, %arg1: i32, %arg2: memref<1x8x32xbf16, #tpu.memory_space<vmem>>, %arg3: memref<1x32x32xbf16, #tpu.memory_space<vmem>>, %arg4: memref<1x1x32xf32, #tpu.memory_space<vmem>>, %arg5: memref<32x128xbf16, #tpu.memory_space<vmem>>, %arg6: memref<1x128xf32, #tpu.memory_space<vmem>>, %arg7: memref<128x128xbf16, #tpu.memory_space<vmem>>, %arg8: memref<1x32x128xbf16, #tpu.memory_space<vmem>>, %arg9: memref<1x1x128xf32, #tpu.memory_space<vmem>>, %arg10: memref<1x8x32xbf16, #tpu.memory_space<vmem>>, %arg11: memref<1x8x128xf32, #tpu.memory_space<vmem>>) attributes {dimension_semantics = [#tpu.dimension_semantics<parallel>, #tpu.dimension_semantics<parallel>], iteration_bounds = array<i64: 2, 1>, scalar_prefetch = 0 : i64, scratch_operands = 0 : i64, tpu.core_type = #tpu.core_type<tc>, window_params = [{transform_indices = @transform_0, window_bounds = array<i64: 1, 8, 32>}, {pipeline_mode = #tpu.pipeline_mode<synchronous>, transform_indices = @transform_1, window_bounds = array<i64: 1, 32, 32>}, {pipeline_mode = #tpu.pipeline_mode<synchronous>, transform_indices = @transform_2, window_bounds = array<i64: 1, 1, 32>}, {pipeline_mode = #tpu.pipeline_mode<synchronous>, transform_indices = @transform_3, window_bounds = array<i64: 32, 128>}, {pipeline_mode = #tpu.pipeline_mode<synchronous>, transform_indices = @transform_4, window_bounds = array<i64: 1, 128>}, {pipeline_mode = #tpu.pipeline_mode<synchronous>, transform_indices = @transform_5, window_bounds = array<i64: 128, 128>}, {pipeline_mode = #tpu.pipeline_mode<synchronous>, transform_indices = @transform_6, window_bounds = array<i64: 1, 32, 128>}, {pipeline_mode = #tpu.pipeline_mode<synchronous>, transform_indices = @transform_7, window_bounds = array<i64: 1, 1, 128>}, {transform_indices = @transform_8, window_bounds = array<i64: 1, 8, 32>}, {transform_indices = @transform_9, window_bounds = array<i64: 1, 8, 128>}]} {
    %c0 = arith.constant 0 : index
    %c0_0 = arith.constant 0 : index
    %c0_1 = arith.constant 0 : index
    %0 = vector.load %arg2[%c0, %c0_0, %c0_1] : memref<1x8x32xbf16, #tpu.memory_space<vmem>>, vector<1x8x32xbf16>
    %1 = vector.shape_cast %0 : vector<1x8x32xbf16> to vector<8x32xbf16>
    %2 = arith.extf %1 : vector<8x32xbf16> to vector<8x32xf32>
    %c0_2 = arith.constant 0 : index
    %c0_3 = arith.constant 0 : index
    %c0_4 = arith.constant 0 : index
    %3 = vector.load %arg3[%c0_2, %c0_3, %c0_4] : memref<1x32x32xbf16, #tpu.memory_space<vmem>>, vector<1x32x32xbf16>
    %4 = vector.shape_cast %3 : vector<1x32x32xbf16> to vector<32x32xbf16>
    %cst = arith.constant dense<0.000000e+00> : vector<8x32xf32>
    %5 = tpu.matmul %1, %4, %cst {dimension_numbers = #tpu.dot_dimension_numbers<[1], [0], [0], [1], [0, 0, 1, 1], [], []>} : vector<8x32xbf16>, vector<32x32xbf16>, vector<8x32xf32> -> vector<8x32xf32>
    %c0_5 = arith.constant 0 : index
    %c0_6 = arith.constant 0 : index
    %c0_7 = arith.constant 0 : index
    %6 = vector.load %arg4[%c0_5, %c0_6, %c0_7] : memref<1x1x32xf32, #tpu.memory_space<vmem>>, vector<1x1x32xf32>
    %7 = vector.shape_cast %6 : vector<1x1x32xf32> to vector<1x32xf32>
    %8 = vector.broadcast %7 : vector<1x32xf32> to vector<8x32xf32>
    %9 = arith.addf %5, %8 : vector<8x32xf32>
    %10 = arith.negf %9 : vector<8x32xf32>
    %11 = math.exp %10 : vector<8x32xf32>
    %cst_8 = arith.constant 1.000000e+00 : f32
    %12 = vector.broadcast %cst_8 : f32 to vector<8x32xf32>
    %13 = arith.addf %12, %11 : vector<8x32xf32>
    %14 = arith.divf %12, %13 : vector<8x32xf32>
    %15 = arith.mulf %2, %14 : vector<8x32xf32>
    %16 = arith.subf %2, %15 : vector<8x32xf32>
    %17 = arith.truncf %15 : vector<8x32xf32> to vector<8x32xbf16>
    %c0_9 = arith.constant 0 : index
    %c0_10 = arith.constant 0 : index
    %18 = vector.load %arg5[%c0_9, %c0_10] : memref<32x128xbf16, #tpu.memory_space<vmem>>, vector<32x128xbf16>
    %cst_11 = arith.constant dense<0.000000e+00> : vector<8x128xf32>
    %19 = tpu.matmul %17, %18, %cst_11 {dimension_numbers = #tpu.dot_dimension_numbers<[1], [0], [0], [1], [0, 0, 1, 1], [], []>} : vector<8x32xbf16>, vector<32x128xbf16>, vector<8x128xf32> -> vector<8x128xf32>
    %c0_12 = arith.constant 0 : index
    %c0_13 = arith.constant 0 : index
    %20 = vector.load %arg6[%c0_12, %c0_13] : memref<1x128xf32, #tpu.memory_space<vmem>>, vector<1x128xf32>
    %21 = vector.broadcast %20 : vector<1x128xf32> to vector<8x128xf32>
    %22 = arith.addf %19, %21 : vector<8x128xf32>
    %cst_14 = arith.constant 0.000000e+00 : f32
    %23 = vector.broadcast %cst_14 : f32 to vector<8x128xf32>
    %24 = arith.maximumf %22, %23 : vector<8x128xf32>
    %25 = arith.truncf %24 : vector<8x128xf32> to vector<8x128xbf16>
    %c0_15 = arith.constant 0 : index
    %c0_16 = arith.constant 0 : index
    %26 = vector.load %arg7[%c0_15, %c0_16] : memref<128x128xbf16, #tpu.memory_space<vmem>>, vector<128x128xbf16>
    %cst_17 = arith.constant dense<0.000000e+00> : vector<8x128xf32>
    %27 = tpu.matmul %25, %26, %cst_17 {dimension_numbers = #tpu.dot_dimension_numbers<[1], [0], [0], [1], [0, 0, 1, 1], [], []>} : vector<8x128xbf16>, vector<128x128xbf16>, vector<8x128xf32> -> vector<8x128xf32>
    %28 = arith.truncf %16 : vector<8x32xf32> to vector<8x32xbf16>
    %c0_18 = arith.constant 0 : index
    %c0_19 = arith.constant 0 : index
    %c0_20 = arith.constant 0 : index
    %29 = vector.load %arg8[%c0_18, %c0_19, %c0_20] : memref<1x32x128xbf16, #tpu.memory_space<vmem>>, vector<1x32x128xbf16>
    %30 = vector.shape_cast %29 : vector<1x32x128xbf16> to vector<32x128xbf16>
    %cst_21 = arith.constant dense<0.000000e+00> : vector<8x128xf32>
    %31 = tpu.matmul %28, %30, %cst_21 {dimension_numbers = #tpu.dot_dimension_numbers<[1], [0], [0], [1], [0, 0, 1, 1], [], []>} : vector<8x32xbf16>, vector<32x128xbf16>, vector<8x128xf32> -> vector<8x128xf32>
    %32 = arith.addf %27, %31 : vector<8x128xf32>
    %c0_22 = arith.constant 0 : index
    %c0_23 = arith.constant 0 : index
    %c0_24 = arith.constant 0 : index
    %33 = vector.load %arg9[%c0_22, %c0_23, %c0_24] : memref<1x1x128xf32, #tpu.memory_space<vmem>>, vector<1x1x128xf32>
    %34 = vector.shape_cast %33 : vector<1x1x128xf32> to vector<1x128xf32>
    %35 = vector.broadcast %34 : vector<1x128xf32> to vector<8x128xf32>
    %36 = arith.addf %32, %35 : vector<8x128xf32>
    %37 = tpu.iota {dimensions = array<i32: 1>} : vector<8x128xi32>
    %c4_i32 = arith.constant 4 : i32
    %38 = vector.broadcast %c4_i32 : i32 to vector<8x128xi32>
    %39 = arith.cmpi sge, %37, %38 : vector<8x128xi32>
    %c12_i32 = arith.constant 12 : i32
    %40 = vector.broadcast %c12_i32 : i32 to vector<8x128xi32>
    %41 = arith.cmpi slt, %37, %40 : vector<8x128xi32>
    %42 = arith.andi %39, %41 : vector<8x128xi1>
    %43 = arith.negf %36 : vector<8x128xf32>
    %44 = math.exp %43 : vector<8x128xf32>
    %cst_25 = arith.constant 1.000000e+00 : f32
    %45 = vector.broadcast %cst_25 : f32 to vector<8x128xf32>
    %46 = arith.addf %45, %44 : vector<8x128xf32>
    %47 = arith.divf %45, %46 : vector<8x128xf32>
    %48 = arith.select %42, %47, %36 : vector<8x128xi1>, vector<8x128xf32>
    %49 = arith.truncf %14 : vector<8x32xf32> to vector<8x32xbf16>
    %c0_26 = arith.constant 0 : index
    %c0_27 = arith.constant 0 : index
    %c0_28 = arith.constant 0 : index
    %50 = vector.load %arg10[%c0_26, %c0_27, %c0_28] : memref<1x8x32xbf16, #tpu.memory_space<vmem>>, vector<1x8x32xbf16>
    %51 = vector.shape_cast %50 : vector<1x8x32xbf16> to vector<8x32xbf16>
    %52 = vector.shape_cast %49 : vector<8x32xbf16> to vector<1x8x32xbf16>
    tpu.vector_store %arg10[%c0_26, %c0_27, %c0_28], %52 {strides = array<i32>} : memref<1x8x32xbf16, #tpu.memory_space<vmem>>, vector<1x8x32xbf16>,
    %c0_29 = arith.constant 0 : index
    %c0_30 = arith.constant 0 : index
    %c0_31 = arith.constant 0 : index
    %53 = vector.load %arg11[%c0_29, %c0_30, %c0_31] : memref<1x8x128xf32, #tpu.memory_space<vmem>>, vector<1x8x128xf32>
    %54 = vector.shape_cast %53 : vector<1x8x128xf32> to vector<8x128xf32>
    %55 = vector.shape_cast %48 : vector<8x128xf32> to vector<1x8x128xf32>
    tpu.vector_store %arg11[%c0_29, %c0_30, %c0_31], %55 {strides = array<i32>} : memref<1x8x128xf32, #tpu.memory_space<vmem>>, vector<1x8x128xf32>,
    return
  }
  func.func @transform_0(%arg0: i32, %arg1: i32) -> (i32, i32, i32) {
    %c0_i32 = arith.constant 0 : i32
    %c0_i32_0 = arith.constant 0 : i32
    return %arg0, %arg1, %c0_i32 : i32, i32, i32
  }
  func.func @transform_1(%arg0: i32, %arg1: i32) -> (i32, i32, i32) {
    %c0_i32 = arith.constant 0 : i32
    %c0_i32_0 = arith.constant 0 : i32
    %c0_i32_1 = arith.constant 0 : i32
    return %arg0, %c0_i32, %c0_i32_0 : i32, i32, i32
  }
  func.func @transform_2(%arg0: i32, %arg1: i32) -> (i32, i32, i32) {
    %c0_i32 = arith.constant 0 : i32
    %c0_i32_0 = arith.constant 0 : i32
    %c0_i32_1 = arith.constant 0 : i32
    return %arg0, %c0_i32, %c0_i32_0 : i32, i32, i32
  }
  func.func @transform_3(%arg0: i32, %arg1: i32) -> (i32, i32) {
    %c0_i32 = arith.constant 0 : i32
    %c0_i32_0 = arith.constant 0 : i32
    %c0_i32_1 = arith.constant 0 : i32
    return %c0_i32, %c0_i32_0 : i32, i32
  }
  func.func @transform_4(%arg0: i32, %arg1: i32) -> (i32, i32) {
    %c0_i32 = arith.constant 0 : i32
    %c0_i32_0 = arith.constant 0 : i32
    %c0_i32_1 = arith.constant 0 : i32
    return %c0_i32, %c0_i32_0 : i32, i32
  }
  func.func @transform_5(%arg0: i32, %arg1: i32) -> (i32, i32) {
    %c0_i32 = arith.constant 0 : i32
    %c0_i32_0 = arith.constant 0 : i32
    %c0_i32_1 = arith.constant 0 : i32
    return %c0_i32, %c0_i32_0 : i32, i32
  }
  func.func @transform_6(%arg0: i32, %arg1: i32) -> (i32, i32, i32) {
    %c0_i32 = arith.constant 0 : i32
    %c0_i32_0 = arith.constant 0 : i32
    %c0_i32_1 = arith.constant 0 : i32
    return %arg0, %c0_i32, %c0_i32_0 : i32, i32, i32
  }
  func.func @transform_7(%arg0: i32, %arg1: i32) -> (i32, i32, i32) {
    %c0_i32 = arith.constant 0 : i32
    %c0_i32_0 = arith.constant 0 : i32
    %c0_i32_1 = arith.constant 0 : i32
    return %arg0, %c0_i32, %c0_i32_0 : i32, i32, i32
  }
  func.func @transform_8(%arg0: i32, %arg1: i32) -> (i32, i32, i32) {
    %c0_i32 = arith.constant 0 : i32
    %c0_i32_0 = arith.constant 0 : i32
    return %arg0, %arg1, %c0_i32 : i32, i32, i32
  }
  func.func @transform_9(%arg0: i32, %arg1: i32) -> (i32, i32, i32) {
    %c0_i32 = arith.constant 0 : i32
    %c0_i32_0 = arith.constant 0 : i32
    return %arg0, %arg1, %c0_i32 : i32, i32, i32
  }
}

module attributes {stable_mosaic.version = 11 : i64} {
  func.func @cpah_kernel(%arg0: i32, %arg1: i32, %arg2: memref<1x8x32xbf16, #tpu.memory_space<vmem>>, %arg3: memref<1x32x32xbf16, #tpu.memory_space<vmem>>, %arg4: memref<1x1x32xf32, #tpu.memory_space<vmem>>, %arg5: memref<32x128xbf16, #tpu.memory_space<vmem>>, %arg6: memref<1x128xf32, #tpu.memory_space<vmem>>, %arg7: memref<128x128xbf16, #tpu.memory_space<vmem>>, %arg8: memref<1x32x128xbf16, #tpu.memory_space<vmem>>, %arg9: memref<1x1x128xf32, #tpu.memory_space<vmem>>, %arg10: memref<1x8x32xbf16, #tpu.memory_space<vmem>>, %arg11: memref<1x8x128xf32, #tpu.memory_space<vmem>>) attributes {dimension_semantics = [#tpu.dimension_semantics<parallel>, #tpu.dimension_semantics<parallel>], iteration_bounds = array<i64: 2, 1>, scalar_prefetch = 0 : i64, scratch_operands = 0 : i64, tpu.core_type = #tpu.core_type<tc>, window_params = [{transform_indices = @transform_0, window_bounds = array<i64: 1, 8, 32>}, {transform_indices = @transform_1, window_bounds = array<i64: 1, 32, 32>}, {transform_indices = @transform_2, window_bounds = array<i64: 1, 1, 32>}, {pipeline_mode = #tpu.pipeline_mode<synchronous>, transform_indices = @transform_3, window_bounds = array<i64: 32, 128>}, {pipeline_mode = #tpu.pipeline_mode<synchronous>, transform_indices = @transform_4, window_bounds = array<i64: 1, 128>}, {pipeline_mode = #tpu.pipeline_mode<synchronous>, transform_indices = @transform_5, window_bounds = array<i64: 128, 128>}, {transform_indices = @transform_6, window_bounds = array<i64: 1, 32, 128>}, {transform_indices = @transform_7, window_bounds = array<i64: 1, 1, 128>}, {transform_indices = @transform_8, window_bounds = array<i64: 1, 8, 32>}, {transform_indices = @transform_9, window_bounds = array<i64: 1, 8, 128>}]} {
    %c0 = arith.constant 0 : index
    %c0_0 = arith.constant 0 : index
    %c0_1 = arith.constant 0 : index
    %0 = vector.load %arg2[%c0, %c0_0, %c0_1] : memref<1x8x32xbf16, #tpu.memory_space<vmem>>, vector<1x8x32xbf16>
    %1 = vector.shape_cast %0 : vector<1x8x32xbf16> to vector<8x32xbf16>
    %2 = arith.extf %1 : vector<8x32xbf16> to vector<8x32xf32>
    %c0_2 = arith.constant 0 : index
    %c0_3 = arith.constant 0 : index
    %c0_4 = arith.constant 0 : index
    %3 = vector.load %arg3[%c0_2, %c0_3, %c0_4] : memref<1x32x32xbf16, #tpu.memory_space<vmem>>, vector<1x32x32xbf16>
    %4 = vector.shape_cast %3 : vector<1x32x32xbf16> to vector<32x32xbf16>
    %cst = arith.constant dense<0.000000e+00> : vector<8x32xf32>
    %5 = tpu.matmul %1, %4, %cst {dimension_numbers = #tpu.dot_dimension_numbers<[1], [0], [0], [1], [0, 0, 1, 1], [], []>} : vector<8x32xbf16>, vector<32x32xbf16>, vector<8x32xf32> -> vector<8x32xf32>
    %c0_5 = arith.constant 0 : index
    %c0_6 = arith.constant 0 : index
    %c0_7 = arith.constant 0 : index
    %6 = vector.load %arg4[%c0_5, %c0_6, %c0_7] : memref<1x1x32xf32, #tpu.memory_space<vmem>>, vector<1x1x32xf32>
    %7 = vector.shape_cast %6 : vector<1x1x32xf32> to vector<1x32xf32>
    %8 = vector.broadcast %7 : vector<1x32xf32> to vector<8x32xf32>
    %9 = arith.addf %5, %8 : vector<8x32xf32>
    %10 = arith.negf %9 : vector<8x32xf32>
    %11 = math.exp %10 : vector<8x32xf32>
    %cst_8 = arith.constant 1.000000e+00 : f32
    %12 = vector.broadcast %cst_8 : f32 to vector<8x32xf32>
    %13 = arith.addf %12, %11 : vector<8x32xf32>
    %14 = arith.divf %12, %13 : vector<8x32xf32>
    %15 = arith.mulf %2, %14 : vector<8x32xf32>
    %16 = arith.subf %2, %15 : vector<8x32xf32>
    %17 = arith.truncf %15 : vector<8x32xf32> to vector<8x32xbf16>
    %c0_9 = arith.constant 0 : index
    %c0_10 = arith.constant 0 : index
    %18 = vector.load %arg5[%c0_9, %c0_10] : memref<32x128xbf16, #tpu.memory_space<vmem>>, vector<32x128xbf16>
    %cst_11 = arith.constant dense<0.000000e+00> : vector<8x128xf32>
    %19 = tpu.matmul %17, %18, %cst_11 {dimension_numbers = #tpu.dot_dimension_numbers<[1], [0], [0], [1], [0, 0, 1, 1], [], []>} : vector<8x32xbf16>, vector<32x128xbf16>, vector<8x128xf32> -> vector<8x128xf32>
    %c0_12 = arith.constant 0 : index
    %c0_13 = arith.constant 0 : index
    %20 = vector.load %arg6[%c0_12, %c0_13] : memref<1x128xf32, #tpu.memory_space<vmem>>, vector<1x128xf32>
    %21 = vector.broadcast %20 : vector<1x128xf32> to vector<8x128xf32>
    %22 = arith.addf %19, %21 : vector<8x128xf32>
    %cst_14 = arith.constant 0.000000e+00 : f32
    %23 = vector.broadcast %cst_14 : f32 to vector<8x128xf32>
    %24 = arith.maximumf %22, %23 : vector<8x128xf32>
    %25 = arith.truncf %24 : vector<8x128xf32> to vector<8x128xbf16>
    %c0_15 = arith.constant 0 : index
    %c0_16 = arith.constant 0 : index
    %26 = vector.load %arg7[%c0_15, %c0_16] : memref<128x128xbf16, #tpu.memory_space<vmem>>, vector<128x128xbf16>
    %cst_17 = arith.constant dense<0.000000e+00> : vector<8x128xf32>
    %27 = tpu.matmul %25, %26, %cst_17 {dimension_numbers = #tpu.dot_dimension_numbers<[1], [0], [0], [1], [0, 0, 1, 1], [], []>} : vector<8x128xbf16>, vector<128x128xbf16>, vector<8x128xf32> -> vector<8x128xf32>
    %28 = arith.truncf %16 : vector<8x32xf32> to vector<8x32xbf16>
    %c0_18 = arith.constant 0 : index
    %c0_19 = arith.constant 0 : index
    %c0_20 = arith.constant 0 : index
    %29 = vector.load %arg8[%c0_18, %c0_19, %c0_20] : memref<1x32x128xbf16, #tpu.memory_space<vmem>>, vector<1x32x128xbf16>
    %30 = vector.shape_cast %29 : vector<1x32x128xbf16> to vector<32x128xbf16>
    %cst_21 = arith.constant dense<0.000000e+00> : vector<8x128xf32>
    %31 = tpu.matmul %28, %30, %cst_21 {dimension_numbers = #tpu.dot_dimension_numbers<[1], [0], [0], [1], [0, 0, 1, 1], [], []>} : vector<8x32xbf16>, vector<32x128xbf16>, vector<8x128xf32> -> vector<8x128xf32>
    %32 = arith.addf %27, %31 : vector<8x128xf32>
    %c0_22 = arith.constant 0 : index
    %c0_23 = arith.constant 0 : index
    %c0_24 = arith.constant 0 : index
    %33 = vector.load %arg9[%c0_22, %c0_23, %c0_24] : memref<1x1x128xf32, #tpu.memory_space<vmem>>, vector<1x1x128xf32>
    %34 = vector.shape_cast %33 : vector<1x1x128xf32> to vector<1x128xf32>
    %35 = vector.broadcast %34 : vector<1x128xf32> to vector<8x128xf32>
    %36 = arith.addf %32, %35 : vector<8x128xf32>
    %37 = tpu.iota {dimensions = array<i32: 1>} : vector<8x128xi32>
    %c4_i32 = arith.constant 4 : i32
    %38 = vector.broadcast %c4_i32 : i32 to vector<8x128xi32>
    %39 = arith.cmpi sge, %37, %38 : vector<8x128xi32>
    %c12_i32 = arith.constant 12 : i32
    %40 = vector.broadcast %c12_i32 : i32 to vector<8x128xi32>
    %41 = arith.cmpi slt, %37, %40 : vector<8x128xi32>
    %42 = arith.andi %39, %41 : vector<8x128xi1>
    %43 = arith.negf %36 : vector<8x128xf32>
    %44 = math.exp %43 : vector<8x128xf32>
    %cst_25 = arith.constant 1.000000e+00 : f32
    %45 = vector.broadcast %cst_25 : f32 to vector<8x128xf32>
    %46 = arith.addf %45, %44 : vector<8x128xf32>
    %47 = arith.divf %45, %46 : vector<8x128xf32>
    %48 = arith.select %42, %47, %36 : vector<8x128xi1>, vector<8x128xf32>
    %49 = arith.truncf %14 : vector<8x32xf32> to vector<8x32xbf16>
    %c0_26 = arith.constant 0 : index
    %c0_27 = arith.constant 0 : index
    %c0_28 = arith.constant 0 : index
    %50 = vector.load %arg10[%c0_26, %c0_27, %c0_28] : memref<1x8x32xbf16, #tpu.memory_space<vmem>>, vector<1x8x32xbf16>
    %51 = vector.shape_cast %50 : vector<1x8x32xbf16> to vector<8x32xbf16>
    %52 = vector.shape_cast %49 : vector<8x32xbf16> to vector<1x8x32xbf16>
    tpu.vector_store %arg10[%c0_26, %c0_27, %c0_28], %52 {strides = array<i32>} : memref<1x8x32xbf16, #tpu.memory_space<vmem>>, vector<1x8x32xbf16>,
    %c0_29 = arith.constant 0 : index
    %c0_30 = arith.constant 0 : index
    %c0_31 = arith.constant 0 : index
    %53 = vector.load %arg11[%c0_29, %c0_30, %c0_31] : memref<1x8x128xf32, #tpu.memory_space<vmem>>, vector<1x8x128xf32>
    %54 = vector.shape_cast %53 : vector<1x8x128xf32> to vector<8x128xf32>
    %55 = vector.shape_cast %48 : vector<8x128xf32> to vector<1x8x128xf32>
    tpu.vector_store %arg11[%c0_29, %c0_30, %c0_31], %55 {strides = array<i32>} : memref<1x8x128xf32, #tpu.memory_space<vmem>>, vector<1x8x128xf32>,
    return
  }
  func.func @transform_0(%arg0: i32, %arg1: i32) -> (i32, i32, i32) {
    %c0_i32 = arith.constant 0 : i32
    %c0_i32_0 = arith.constant 0 : i32
    return %arg0, %arg1, %c0_i32 : i32, i32, i32
  }
  func.func @transform_1(%arg0: i32, %arg1: i32) -> (i32, i32, i32) {
    %c0_i32 = arith.constant 0 : i32
    %c0_i32_0 = arith.constant 0 : i32
    %c0_i32_1 = arith.constant 0 : i32
    return %arg0, %c0_i32, %c0_i32_0 : i32, i32, i32
  }
  func.func @transform_2(%arg0: i32, %arg1: i32) -> (i32, i32, i32) {
    %c0_i32 = arith.constant 0 : i32
    %c0_i32_0 = arith.constant 0 : i32
    %c0_i32_1 = arith.constant 0 : i32
    return %arg0, %c0_i32, %c0_i32_0 : i32, i32, i32
  }
  func.func @transform_3(%arg0: i32, %arg1: i32) -> (i32, i32) {
    %c0_i32 = arith.constant 0 : i32
    %c0_i32_0 = arith.constant 0 : i32
    %c0_i32_1 = arith.constant 0 : i32
    return %c0_i32, %c0_i32_0 : i32, i32
  }
  func.func @transform_4(%arg0: i32, %arg1: i32) -> (i32, i32) {
    %c0_i32 = arith.constant 0 : i32
    %c0_i32_0 = arith.constant 0 : i32
    %c0_i32_1 = arith.constant 0 : i32
    return %c0_i32, %c0_i32_0 : i32, i32
  }
  func.func @transform_5(%arg0: i32, %arg1: i32) -> (i32, i32) {
    %c0_i32 = arith.constant 0 : i32
    %c0_i32_0 = arith.constant 0 : i32
    %c0_i32_1 = arith.constant 0 : i32
    return %c0_i32, %c0_i32_0 : i32, i32
  }
  func.func @transform_6(%arg0: i32, %arg1: i32) -> (i32, i32, i32) {
    %c0_i32 = arith.constant 0 : i32
    %c0_i32_0 = arith.constant 0 : i32
    %c0_i32_1 = arith.constant 0 : i32
    return %arg0, %c0_i32, %c0_i32_0 : i32, i32, i32
  }
  func.func @transform_7(%arg0: i32, %arg1: i32) -> (i32, i32, i32) {
    %c0_i32 = arith.constant 0 : i32
    %c0_i32_0 = arith.constant 0 : i32
    %c0_i32_1 = arith.constant 0 : i32
    return %arg0, %c0_i32, %c0_i32_0 : i32, i32, i32
  }
  func.func @transform_8(%arg0: i32, %arg1: i32) -> (i32, i32, i32) {
    %c0_i32 = arith.constant 0 : i32
    %c0_i32_0 = arith.constant 0 : i32
    return %arg0, %arg1, %c0_i32 : i32, i32, i32
  }
  func.func @transform_9(%arg0: i32, %arg1: i32) -> (i32, i32, i32) {
    %c0_i32 = arith.constant 0 : i32
    %c0_i32_0 = arith.constant 0 : i32
    return %arg0, %arg1, %c0_i32 : i32, i32, i32
  }
}

</mosaic_0001>

<bundles_post_ra>
// kernel: tpu_custom_call.1
= control target key start
LH: loop header
LB: loop body
LE: loop exit
PB: predicated region body
PF: predicated region fallthrough
CT: control target
= control target key end

     0   :  { %s1821_s0 = inlined_call_operand.hbm [shape: bf16[2,8,32], index: 0, kind: input, shape index: {}]   ;;  %s1822_s1 = inlined_call_operand.hbm [shape: bf16[2,32,32], index: 1, kind: input, shape index: {}]   ;;  %s1823_s2 = inlined_call_operand.hbm [shape: f32[2,1,32], index: 2, kind: input, shape index: {}]   ;;  %s1824_s3 = inlined_call_operand.hbm [shape: bf16[32,128], index: 3, kind: input, shape index: {}]   ;;  %s1825_s4 = inlined_call_operand.vmem [shape: f32[1,128], index: 4, kind: input, shape index: {}]   ;;  %s1826_s5 = inlined_call_operand.hbm [shape: bf16[128,128], index: 5, kind: input, shape index: {}]   ;;  %s1827_s6 = inlined_call_operand.hbm [shape: bf16[2,32,128], index: 6, kind: input, shape index: {}]   ;;  %s1828_s7 = inlined_call_operand.vmem [shape: f32[2,1,128], index: 7, kind: input, shape index: {}]   ;;  %s1829_s8 = inlined_call_operand.hbm [shape: bf16[2,8,32], index: 8, kind: output, shape index: {0}]   ;;  %s1830_s9 = inlined_call_operand.hbm [shape: f32[2,8,128], index: 9, kind: output, shape index: {1}]  }
   0x1   :  { %1839 = sst [smem:[#allocation24_spill]] %s1821_s0 }
   0x2   :  { %1840 = sst [smem:[#allocation25_spill]] %s1822_s1 }
   0x3   :  { %1841 = sst [smem:[#allocation26_spill]] %s1824_s3 }
   0x4   :  { %1842 = sst [smem:[#allocation27_spill]] %s1829_s8 }
   0x5   :  { %1843 = sst [smem:[#allocation28_spill]] %s1830_s9 }
   0x6   :  { %15 = vsyncpa [#allocation3], 0 }
   0x7   :  { %17 = vsyncpa [#allocation3 + $0x1], 0 }
   0x8   :  { %18 = vsyncpa [#allocation6], 0 }
   0x9   :  { %19 = vsyncpa [#allocation9], 0 }
   0xa   :  { %20 = vsyncpa [#allocation12], 0 }
   0xb   :  { %21 = vsyncpa [#allocation4], 0 }
   0xc   :  { %23 = vsyncpa [#allocation4 + $0x1], 0 }
   0xd   :  { %24 = vsyncpa [#allocation15], 0 }
   0xe   :  { %26 = vsyncpa [#allocation15 + $0x1], 0  ;;  %s1542_s30 = smov 0   ;;  %s1544_s10 = smov 0  }
   0xf   :  { %s1546_s11 = smov 0   ;;  %s1548_s12 = smov 0  }
  0x10   :  { %s1550_s13 = smov 0   ;;  %s1552_s14 = smov 0  }
  0x11 LB: > { %1844 = sst [smem:[#allocation22_spill]] %s1463_s30  ;;  %s1831_s15 = sadd.s32 4294967295, %s1483_s14   ;;  %s1483_s14 = sphi %s1552_s14, %s32_s14   ;;  %s1479_s13 = sphi %s1550_s13, %s1871_s13   ;;  %s1475_s12 = sphi %s1548_s12, %s1870_s12   ;;  %s1471_s11 = sphi %s1546_s11, %s1869_s11   ;;  %s1467_s10 = sphi %s1544_s10, %s1868_s10   ;;  %s1463_s30 = sphi %s1542_s30, %s1867_s30  }
  0x12   : > { %s958_s16 = sadd.s32 4294967294, %s1483_s14   ;;  %p66_p0 = scmp.ne.s32.totalorder %s1467_s10, %s1463_s30 }
  0x13   : > { %p1578_p1 = scmp.eq.s32.totalorder %s1831_s15, 0  ;;  %p265_p2 = scmp.eq.s32.totalorder %s958_s16, 1 }
  0x14   : > { %p959_p3 = scmp.ge.s32.totalorder %s1483_s14, 1  ;;  %p300_p5 = scmp.lt.s32.totalorder %s1483_s14, 3 }
  0x15   : > { %p1585_p4 = por %p1578_p1, %p66_p0  ;;  %p1590_p6 = por %p265_p2, %p66_p0 }
  0x16   : > { %s1832_s20 = sshll.u32 %s1475_s12, 4  ;;  %p1595_p7 = pnand %p959_p3, %p300_p5 }
  0x17   : > { %s1847_s19 = scalar_select %p1590_p6, 1, 0 }
  0x18   : > { %s1850_s1 = sld [smem:[#allocation25_spill]]  ;;  %p1078_p8 = pneg %p1595_p7 }
  0x19   : > { %1848 = sst [smem:[#allocation23_spill]] %s1847_s19  ;;  %s1485_s26 = smov [#allocation5]  }
  0x1a   : > { %s316_s27 = sshll.u32 %s1485_s26, 4  ;;  %p1611_p9 = pnand %p1078_p8, %p1585_p4  ;;  %s317_s27 = int_to_ptr.vmem [resolvable:$true] %s316_s27 }
  0x1c   : > { %p1181_p12 = pneg %p1611_p9 }
  0x1e   : > { %s313_s24 = scalar_lea.hbm %s1850_s1, %s1832_s20 }
  0x1f   : > { %s314_s25 = sshll.u32 %s313_s24, 4  ;;  %s1184_s24 = scalar_lea.hbm %s1850_s1, 32  ;;  %s315_s25 = int_to_ptr.hbm [resolvable:$true] %s314_s25 }
  0x20   : > { %s1177_s29 = sshra.s32 %s315_s25, 4  ;;  %s1178_s29 = int_to_ptr.hbm [resolvable:$true] %s1177_s29 }
  0x21   : > { %s1179_s16 = scalar_lea.hbm %s1178_s29, 16  ;;  %p1185_p2 = scmp.lt.s32.totalorder %s1178_s29, %s1850_s1 }
  0x22   : > { %p1180_p11 = scmp.ne.s32.totalorder %s1178_s29, %s1179_s16  ;;  %p1186_p3 = scmp.lt.s32.totalorder %s1184_s24, %s1179_s16 }
  0x24   : > { %p1182_p13 = pnand %p1181_p12, %p1180_p11  ;;  %p1187_p5 = por %p1186_p3, %p1185_p2 }
  0x26   : > { %p1183_p0 = pneg %p1182_p13 }
  0x28   : > { %p1188_p10 = pnand %p1187_p5, %p1183_p0 }
  0x2a   : > { %1191 = shalt.err (!%p1188_p10)
}
  0x2b   : > { %s1837_s20 = smov 64   ;;  %s1487_s19 = smov 4  }
  0x2c   : > { %1081 = dma.hbm_to_vmem [thread:$0]  (!%p1611_p9), %s315_s25, 256, %s317_s27, [#allocation6], %s1837_s20, %s1837_s20, %s1487_s19  }
  0x2d   : > { %s1852_s3 = sld [smem:[#allocation26_spill]]  ;;  %s1488_s29 = smov [#allocation8]  }
  0x2e   : > { %s343_s16 = sshll.u32 %s1488_s29, 4  ;;  %p1640_p10 = pnand %p1078_p8, %p1578_p1  ;;  %s344_s16 = int_to_ptr.vmem [resolvable:$true] %s343_s16 }
  0x2f   : > { %s328_s25 = scalar_lea.hbm %s1823_s2, %s1475_s12  ;;  %s1489_s22 = smov [#allocation7]  }
  0x30   : > { %s330_s27 = sshll.u32 %s328_s25, 4  ;;  %s332_s23 = sshll.u32 %s1489_s22, 4  ;;  %s331_s27 = int_to_ptr.hbm [resolvable:$true] %s330_s27  ;;  %s333_s23 = int_to_ptr.vmem [resolvable:$true] %s332_s23 }
  0x31   : > { %s358_s30 = sshll.u32 %s1826_s5, 4  ;;  %s1237_s9 = sshra.s32 %s331_s27, 4  ;;  %s1238_s9 = int_to_ptr.hbm [resolvable:$true] %s1237_s9  ;;  %s359_s30 = int_to_ptr.hbm [resolvable:$true] %s358_s30 }
  0x32   : > { %s1239_s8 = scalar_lea.hbm %s1238_s9, 1  ;;  %p1245_p0 = scmp.lt.s32.totalorder %s1238_s9, %s1823_s2 }
  0x33   : > { %s341_s15 = sshll.u32 %s1852_s3, 4  ;;  %p1240_p8 = scmp.ne.s32.totalorder %s1238_s9, %s1239_s8  ;;  %s342_s15 = int_to_ptr.hbm [resolvable:$true] %s341_s15 }
  0x34   : > { %1087 = dma.hbm_to_vmem [thread:$0]  (!%p1640_p10), %s342_s15, 256, %s344_s16, [#allocation9], %s1837_s20, %s1837_s20, %s1487_s19  }
  0x35   : > { %p1242_p11 = pnand %p1240_p8, %p1181_p12  ;;  %s1244_s15 = scalar_lea.hbm %s1823_s2, 2 }
  0x36   : > { %p1246_p2 = scmp.lt.s32.totalorder %s1244_s15, %s1239_s8 }
  0x37   : > { %p1243_p13 = pneg %p1242_p11 }
  0x38   : > { %p1247_p3 = por %p1246_p2, %p1245_p0 }
  0x3a   : > { %p1248_p5 = pnand %p1247_p3, %p1243_p13 }
  0x3c   : > { %1251 = shalt.err (!%p1248_p5)
}
  0x3d   : > { %1084 = dma.hbm_to_vmem [thread:$0]  (!%p1611_p9), %s331_s27, 16, %s333_s23, [#allocation6]  }
  0x3e   : > { %s1490_s3 = smov [#allocation10]   ;;  %s1854_s29 = sshll.u32 %s1475_s12, 4 }
  0x3f   : > { %s360_s22 = sshll.u32 %s1490_s3, 4  ;;  %s374_s20 = scalar_lea.hbm %s1827_s6, %s1854_s29  ;;  %s361_s22 = int_to_ptr.vmem [resolvable:$true] %s360_s22 }
  0x40   : > { %s375_s9 = sshll.u32 %s374_s20, 4  ;;  %s1855_s8 = smov 64   ;;  %s376_s9 = int_to_ptr.hbm [resolvable:$true] %s375_s9 }
  0x41   : > { %1090 = dma.hbm_to_vmem [thread:$0]  (!%p1640_p10), %s359_s30, 1024, %s361_s22, [#allocation9], %s1855_s8, %s1855_s8, %s1487_s19  }
  0x42   : > { %s1491_s15 = smov [#allocation11]   ;;  %s1297_s27 = sshra.s32 %s376_s9, 4  ;;  %s1298_s27 = int_to_ptr.hbm [resolvable:$true] %s1297_s27 }
  0x43   : > { %s377_s16 = sshll.u32 %s1491_s15, 4  ;;  %s1299_s23 = scalar_lea.hbm %s1298_s27, 16  ;;  %s378_s16 = int_to_ptr.vmem [resolvable:$true] %s377_s16 }
  0x44   : > { %p1300_p8 = scmp.ne.s32.totalorder %s1298_s27, %s1299_s23  ;;  %s1304_s20 = scalar_lea.hbm %s1827_s6, 32 }
  0x45   : > { %p1305_p10 = scmp.lt.s32.totalorder %s1298_s27, %s1827_s6  ;;  %p1306_p0 = scmp.lt.s32.totalorder %s1304_s20, %s1299_s23 }
  0x46   : > { %p1302_p11 = pnand %p1300_p8, %p1181_p12 }
  0x47   : > { %p1307_p2 = por %p1306_p0, %p1305_p10 }
  0x48   : > { %p1303_p13 = pneg %p1302_p11 }
  0x4a   : > { %p1308_p3 = pnand %p1307_p2, %p1303_p13 }
  0x4c   : > { %1311 = shalt.err (!%p1308_p3)
}
  0x4d   : > { %1093 = dma.hbm_to_vmem [thread:$0]  (!%p1611_p9), %s376_s9, 256, %s378_s16, [#allocation12], %s1855_s8, %s1855_s8, %s1487_s19  }
  0x4e   : > { %s44_s30 = sadd.s32 1, %s1479_s13  ;;  %s53_s22 = sadd.s32 1, %s1471_s11 }
  0x4f   : > { %p46_p12 = scmp.ge.s32.totalorder %s44_s30, 2  ;;  %p60_p5 = scmp.ne.s32.totalorder %s1471_s11, %s1467_s10 }
  0x50   : > { %p61_p8 = scmp.eq.s32.totalorder %s1483_s14, 0  ;;  %s1856_s28 = sadd.s32 4294967295, %s1483_s14  }
  0x51   : > { %p259_p11 = scmp.eq.s32.totalorder %s1856_s28, 1  ;;  %s1873_s30 = smov (%p46_p12, %s44_s30), 0 }
  0x52   : > { %p1700_p13 = por %p61_p8, %p60_p5  ;;  %s48_s19 = ssub.s32 %s1479_s13, %s1873_s30 }
  0x53   : > { %p1704_p10 = por %p259_p11, %p60_p5  ;;  %p1107_p9 = scmp.lt.s32.totalorder %s1483_s14, 2 }
  0x54   : > { %p51_p0 = scmp.eq.s32.totalorder %s48_s19, 0  ;;  %s397_s9 = sand.u32 1, %s1471_s11  }
  0x55   : > { %s967_s8 = sshll.u32 %s397_s9, 2  ;;  %s968_s16 = sshll.u32 %s1479_s13, 2 }
  0x56   : > { %s1713_s15 = scalar_select %p51_p0, %s1471_s11, %s53_s22  }
  0x57   : > { %s1859_s0 = sld [smem:[#allocation24_spill]]  ;;  %s401_s3 = scalar_lea.vmem [#allocation2], %s967_s8 }
  0x58   : > { %s410_s20 = sshll.u32 %s401_s3, 4  ;;  %p1095_p2 = pnand %p1107_p9, %p1700_p13  ;;  %s411_s20 = int_to_ptr.vmem [resolvable:$true] %s410_s20 }
  0x59   : > { %s398_s29 = scalar_lea.sflag [#allocation3], %s397_s9  ;;  %s1724_s22 = sand.u32 (!%p1595_p7), 1, %s1467_s10  }
  0x5a   : > { %s970_s28 = sshll.u32 (!%p1595_p7), %s1724_s22, 2  ;;  %s422_s19 = scalar_lea.sflag (!%p1595_p7), [#allocation3], %s1724_s22 }
  0x5b   : > { %419 = sbr.rel (%p1595_p7) target bundleno = 571 (0x23b), region = 52  ;;  %s425_s8 = scalar_lea.vmem (!%p1595_p7), [#allocation2], %s970_s28 }
  0x5d   : > { %s406_s25 = scalar_lea.hbm %s1859_s0, %s968_s16 }
  0x5e   : > { %s408_s24 = sshll.u32 %s406_s25, 4  ;;  %s409_s24 = int_to_ptr.hbm [resolvable:$true] %s408_s24 }
  0x5f   : > { %1097 = dma.hbm_to_vmem [thread:$0]  (!%p1095_p2), %s409_s24, 64, %s411_s20, %s398_s29  }
  0x60   : > { %1438 = dma.done.wait (%p1585_p4), %s422_s19, 64  }
  0x61   : > { %1440 = vsyncadd (%p1585_p4), %s422_s19, 4294967232 }
  0x62   : > { %1442 = dma.done.wait (%p1585_p4), [#allocation6], 272  }
  0x63   : > { %1444 = vsyncadd (%p1585_p4), [#allocation6], 4294967024 }
  0x64   : > { %1446 = dma.done.wait (%p1578_p1), [#allocation9], 1280  }
  0x65   : > { %1448 = vsyncadd (%p1578_p1), [#allocation9], 4294966016 }
  0x66   : > { %1450 = dma.done.wait (%p1585_p4), [#allocation12], 256  }
  0x67   : > { %1452 = vsyncadd (%p1585_p4), [#allocation12], 4294967040  ;;  %v1045_v0 = vld [vmem:[#allocation5 + $0x8] sm:$0xff]  ;;  %v1044_v1 = vld [vmem:[#allocation5] sm:$0xff]  ;;  %vm520_vm0 = vcmask 261120   ;;  %vm738_vm5 = vcmask 257024  }
  0x68   : > { %530 = vmatpush.bf16.msra.mxu0 %v1045_v0  ;;  %v498_v2 = vld [vmem:[%s425_s8] sm:$0xf]  ;;  %v1057_v4 = vld [vmem:[#allocation11 + $0x8] sm:$0xff]  ;;  %v1056_v6 = vld [vmem:[#allocation11] sm:$0xff]  ;;  %s486_s17 = scalar_lea.vmem [#allocation13], %s970_s28  ;;  %p494_p1 = scmp.lt.s32.totalorder %s1475_s12, 1 }
  0x69   : > { %v1047_v3 = vld [vmem:[#allocation8 + $0x8] sm:$0xff]  ;;  %639 = vmatpush.bf16.msra.mxu2 %v1057_v4  ;;  %v1046_v5 = vld [vmem:[#allocation8] sm:$0xff]  ;;  %v1166_v7 = vld [vmem:[#allocation7] ss:$0 sm:$0xff]  ;;  %v499_v26 = vunpack.c.l.bf16 %v498_v2  ;;  %s1038_s23 = sshll.u32 %s1475_s12, 2  ;;  %s1860_s20 = sld [smem:[#allocation27_spill]] }
  0x6a   : > { %588 = vmatpush.bf16.msra.mxu1 %v1047_v3  ;;  %v1055_v11 = vld [vmem:[#allocation10 + $0x38] sm:$0xff]  ;;  %v1054_v12 = vld [vmem:[#allocation10 + $0x30] sm:$0xff]  ;;  %v1053_v15 = vld [vmem:[#allocation10 + $0x28] sm:$0xff]  ;;  %s1753_s18 = scalar_select %p494_p1, %s1475_s12, 1 }
  0x6b   : > { %694 = vmatpush.bf16.msra.mxu3 %v1055_v11  ;;  %v1052_v17 = vld [vmem:[#allocation10 + $0x20] sm:$0xff]  ;;  %v1051_v18 = vld [vmem:[#allocation10 + $0x18] sm:$0xff]  ;;  %v1050_v22 = vld [vmem:[#allocation10 + $0x10] sm:$0xff]  ;;  %s760_s29 = sshll.u32 %s486_s17, 4  ;;  %s742_s19 = scalar_lea.sflag [#allocation4], %s1724_s22  ;;  %s761_s29 = int_to_ptr.vmem [resolvable:$true] %s760_s29 }
  0x6c   : > { %531 = vmatpush.bf16.msra.mxu0 %v1044_v1  ;;  %v1049_v36 = vld [vmem:[#allocation10 + $0x8] sm:$0xff]  ;;  %v1048_v37 = vld [vmem:[#allocation10] sm:$0xff]  ;;  %v1167_v38 = vld [vmem:[%s1825_s4] ss:$0 sm:$0xff] }
  0x6d   : > { %640 = vmatpush.bf16.msra.mxu2 %v1056_v6 }
  0x6e   : > { %589 = vmatpush.bf16.msra.mxu1 %v1046_v5 }
  0x6f   : > { %983 = vmatmul.msk.bf16.vlgmr.msra.gmra.mxu0 %vm520_vm0, %v498_v2  ;;  %695 = vmatpush.bf16.msra.mxu3 %v1054_v12  ;;  %s758_s24 = scalar_lea.hbm %s1860_s20, %s1038_s23  ;;  %s1377_s27 = scalar_lea.hbm %s1860_s20, 8 }
  0x70   : > { %s762_s28 = sshll.u32 %s758_s24, 4  ;;  %s763_s28 = int_to_ptr.hbm [resolvable:$true] %s762_s28 }
  0x71   : > { %s1371_s8 = sshra.s32 %s763_s28, 4  ;;  %s1372_s8 = int_to_ptr.hbm [resolvable:$true] %s1371_s8 }
  0x72   : > { %s1373_s21 = scalar_lea.hbm %s1372_s8, 4  ;;  %p1378_p12 = scmp.lt.s32.totalorder %s1372_s8, %s1860_s20 }
  0x73   : > { %696 = vmatpush.bf16.msra.mxu3 %v1053_v15  ;;  %p1374_p4 = scmp.ne.s32.totalorder %s1372_s8, %s1373_s21  ;;  %p1379_p5 = scmp.lt.s32.totalorder %s1377_s27, %s1373_s21 }
  0x75   : > { %p1375_p7 = pnand %p1374_p4, %p1704_p10  ;;  %p1380_p8 = por %p1379_p5, %p1378_p12 }
  0x77   : > { %697 = vmatpush.bf16.msra.mxu3 %v1052_v17  ;;  %p1376_p3 = pneg %p1375_p7 }
  0x79   : > { %p1381_p11 = pnand %p1380_p8, %p1376_p3 }
  0x7b   : > { %698 = vmatpush.bf16.msra.mxu3 %v1051_v18 }
  0x7f   : > { %699 = vmatpush.bf16.msra.mxu3 %v1050_v22 }
  0x83   : > { %700 = vmatpush.bf16.msra.mxu3 %v1049_v36 }
  0x87   : > { %701 = vmatpush.bf16.msra.mxu3 %v1048_v37 }
  0xec   : > { %v533_v8 = vpop.f32.mrf.mxu0 }
  0xed   : > { %v534_v9 = vadd.f32 %v1166_v7, %v533_v8 }
  0xef   : > { %v984_v10 = vmul.f32 -1.442695, %v534_v9 }
  0xf1   : > { %1169 = vpow2.f32 %v984_v10 }
  0xf4   : > { %v535_v13 = vpop.f32.mrf.mxu0 }
  0xf7   : > { %v1170_v14 = vpop.eup %1169 }
  0xf8   : > { %v540_v16 = vadd.f32 1.0, %v1170_v14 }
  0xfa   : > { %1171 = vrcp.f32 %v540_v16  ;;  %v552_v23 = vand.u32 2147483648, %v540_v16  ;;  %v550_v25 = vand.u32 2147483647, %v540_v16  ;;  %vm546_vm2 = vweird.f32 %v540_v16 }
  0xfc   : > { %v553_v28 = vor.u32 1.1754944e-38, %v552_v23  ;;  %vm551_vm4 = vcmp.eq.f32.partialorder %v550_v25, 8.507059e+37 }
 0x100   : > { %v1172_v19 = vpop.eup %1171 }
 0x101   : > { %v542_v20 = vmul.f32 %v1172_v19, %v540_v16  ;;  %vm547_vm1 = vweird.f32 %v1172_v19 }
 0x102   : > { %vm548_vm3 = vmor %vm546_vm2, %vm547_vm1 }
 0x103   : > { %v543_v21 = vsub.f32 1.0, %v542_v20 }
 0x105   : > { %v544_v24 = vmul.f32 %v1172_v19, %v543_v21 }
 0x107   : > { %v545_v27 = vadd.f32 %v1172_v19, %v544_v24 }
 0x109   : > { %v549_v29 = vsel %vm548_vm3, %v1172_v19, %v545_v27 }
 0x10a   : > { %v554_v30 = vsel %vm551_vm4, %v553_v28, %v549_v29 }
 0x10b   : > { %v556_v31 = vmul.f32 %v554_v30, %v499_v26  ;;  %v737_v32 = vpack.c.bf16 %v554_v30, %v554_v30 }
 0x10d   : > { %v558_v33 = vpack.c.bf16 %v556_v31, %v556_v31  ;;  %v557_v34 = vsub.f32 %v499_v26, %v556_v31  ;;  %739 = vst.msk [vmem:[%s486_s17] sm:$0xf] %vm738_vm5, %v737_v32 }
 0x10f   : > { %993 = vmatmul.msk.bf16.vlgmr.msra.gmra.mxu1 %vm520_vm0, %v558_v33  ;;  %v613_v35 = vpack.c.bf16 %v557_v34, %v557_v34 }
 0x111   : > { %1002 = vmatmul.msk.bf16.vlgmr.msra.gmra.mxu2 %vm520_vm0, %v613_v35 }
 0x18c   : > { %v591_v39 = vpop.f32.mrf.mxu1 }
 0x18d   : > { %v592_v40 = vadd.f32 %v1167_v38, %v591_v39 }
 0x18f   : > { %v595_v41 = vmax.f32 %v592_v40, 0.0 }
 0x191   : > { %v596_v42 = vpack.c.bf16 %v595_v41, %v595_v41 }
 0x193   : > { %702 = vmatmul.bf16.vlgmr.msra.gmra.mxu3 %v596_v42 }
 0x194   : > { %v593_v43 = vpop.f32.mrf.mxu1  ;;  %v642_v44 = vpop.f32.mrf.mxu2 }
 0x19c   : > { %v644_v45 = vpop.f32.mrf.mxu2 }
 0x19d   : > { %1384 = shalt.err (!%p1381_p11)
}
 0x19e   : > { %1074 = dma.vmem_to_hbm [thread:$0]  (%p1704_p10), %s761_s29, 64, %s763_s28, %s742_s19   ;;  %v712_v54 = vlaneseq }
 0x19f   : > { %s1861_s25 = scalar_lea.vmem %s1828_s7, %s1753_s18  ;;  %s974_s0 = sshll.u32 %s1724_s22, 3 }
 0x1a0   : > { %v1168_v46 = vld [vmem:[%s1861_s25] ss:$0 sm:$0xff]  ;;  %v713_v56 = vand.u32 127, %v712_v54  ;;  %s1039_s9 = sshll.u32 %s1475_s12, 3  ;;  %s1862_s24 = sld [smem:[#allocation28_spill]] }
 0x1a1   : > { %s493_s28 = scalar_lea.vmem [#allocation14], %s974_s0  ;;  %s747_s12 = scalar_lea.sflag [#allocation15], %s1724_s22 }
 0x1a2   : > { %vm714_vm6 = vcmp.ge.s32.totalorder %v713_v56, 4  ;;  %vm715_vm7 = vcmp.lt.s32.totalorder %v713_v56, 12  ;;  %s775_s19 = sshll.u32 %s493_s28, 4  ;;  %s776_s19 = int_to_ptr.vmem [resolvable:$true] %s775_s19 }
 0x1a3   : > { %vm716_vm9 = vmand %vm714_vm6, %vm715_vm7 }
 0x1a6   : > { %s773_s29 = scalar_lea.hbm %s1862_s24, %s1039_s9  ;;  %s1405_s17 = scalar_lea.hbm %s1862_s24, 16 }
 0x1a7   : > { %s777_s8 = sshll.u32 %s773_s29, 4  ;;  %s778_s8 = int_to_ptr.hbm [resolvable:$true] %s777_s8 }
 0x1a8   : > { %s1399_s21 = sshra.s32 %s778_s8, 4  ;;  %s1400_s21 = int_to_ptr.hbm [resolvable:$true] %s1399_s21 }
 0x1a9   : > { %s1401_s1 = scalar_lea.hbm %s1400_s21, 8  ;;  %p1406_p2 = scmp.lt.s32.totalorder %s1400_s21, %s1862_s24 }
 0x1aa   : > { %p1402_p13 = scmp.ne.s32.totalorder %s1400_s21, %s1401_s1  ;;  %p1407_p1 = scmp.lt.s32.totalorder %s1405_s17, %s1401_s1 }
 0x1ac   : > { %p1403_p9 = pnand %p1402_p13, %p1704_p10  ;;  %p1408_p4 = por %p1407_p1, %p1406_p2 }
 0x1ae   : > { %p1404_p0 = pneg %p1403_p9 }
 0x1b0   : > { %p1409_p7 = pnand %p1408_p4, %p1404_p0 }
 0x216   : > { %v703_v47 = vpop.f32.mrf.mxu3 }
 0x217   : > { %v704_v48 = vadd.f32 %v703_v47, %v642_v44 }
 0x219   : > { %v711_v49 = vadd.f32 %v1168_v46, %v704_v48 }
 0x21b   : > { %v1035_v50 = vmul.f32 -1.442695, %v711_v49 }
 0x21d   : > { %1173 = vpow2.f32 %v1035_v50 }
 0x21e   : > { %v705_v51 = vpop.f32.mrf.mxu3 }
 0x223   : > { %v1174_v52 = vpop.eup %1173 }
 0x224   : > { %v720_v53 = vadd.f32 1.0, %v1174_v52 }
 0x226   : > { %1175 = vrcp.f32 %v720_v53  ;;  %v732_v59 = vand.u32 2147483648, %v720_v53  ;;  %v730_v61 = vand.u32 2147483647, %v720_v53  ;;  %vm726_vm10 = vweird.f32 %v720_v53 }
 0x228   : > { %v733_v63 = vor.u32 1.1754944e-38, %v732_v59  ;;  %vm731_vm12 = vcmp.eq.f32.partialorder %v730_v61, 8.507059e+37 }
 0x22c   : > { %v1176_v55 = vpop.eup %1175 }
 0x22d   : > { %v722_v57 = vmul.f32 %v1176_v55, %v720_v53  ;;  %vm727_vm8 = vweird.f32 %v1176_v55 }
 0x22e   : > { %vm728_vm11 = vmor %vm726_vm10, %vm727_vm8 }
 0x22f   : > { %v723_v58 = vsub.f32 1.0, %v722_v57 }
 0x231   : > { %v724_v60 = vmul.f32 %v1176_v55, %v723_v58 }
 0x233   : > { %v725_v62 = vadd.f32 %v1176_v55, %v724_v60 }
 0x235   : > { %v729_v0 = vsel %vm728_vm11, %v1176_v55, %v725_v62 }
 0x236   : > { %v734_v1 = vsel %vm731_vm12, %v733_v63, %v729_v0 }
 0x237   : > { %v736_v2 = vsel %vm716_vm9, %v734_v1, %v711_v49 }
 0x238   : > { %740 = vst [vmem:[%s493_s28] sm:$0xff] %v736_v2 }
 0x239   : > { %1412 = shalt.err (!%p1409_p7)
}
 0x23a   : > { %1075 = dma.vmem_to_hbm [thread:$0]  (%p1704_p10), %s776_s19, 128, %s778_s8, %s747_s12  }
 0x23b PF: > { %s1863_s22 = sld [smem:[#allocation22_spill]]  ;;  %p1865_p3 = scmp.ge.s32.totalorder %s1483_s14, 2 }
 0x23d   : > { %p1099_p12 = pnand %p1865_p3, %p1590_p6 }
 0x23f   : > { %p1100_p5 = pneg %p1099_p12 }
 0x241   : > { %s789_s9 = sand.u32 1, %s1863_s22  }
 0x242   : > { %s790_s18 = scalar_lea.sflag [#allocation4], %s789_s9 }
 0x243   : > { %1454 = dma.done.wait (%p1100_p5), %s790_s18, 64  }
 0x244   : > { %1456 = vsyncadd (%p1100_p5), %s790_s18, 4294967232  ;;  %s800_s3 = scalar_lea.sflag [#allocation15], %s789_s9 }
 0x245   : > { %1458 = dma.done.wait (%p1100_p5), %s800_s3, 128  }
 0x246   : > { %1460 = vsyncadd (%p1100_p5), %s800_s3, 4294967168  ;;  %s32_s14 = sadd.s32 1, %s1483_s14   ;;  %s1866_s26 = smov %s1873_s30 }
 0x247   : > { %p29_p8 = scmp.ge.s32.totalorder %s32_s14, 4   ;;  %s1867_s30 = smov %s1467_s10 }
 0x248   : > { %s1868_s10 = smov %s1471_s11  ;;  %s1869_s11 = smov %s1713_s15 }
 0x249   : > { %s1870_s12 = smov %s1479_s13  ;;  %s1871_s13 = smov %s1866_s26 }
 0x24a   :  { %31 = sbr.rel (!%p29_p8) target bundleno = 17 (0x11), region = 140 }
 0x24f   :  { %806 = vsyncpa [#allocation3], 1 }
 0x250   :  { %808 = vsyncpa [#allocation3 + $0x1], 1 }
 0x251   :  { %809 = vsyncpa [#allocation6], 1 }
 0x252   :  { %810 = vsyncpa [#allocation9], 1 }
 0x253   :  { %811 = vsyncpa [#allocation12], 1 }
 0x254   :  { %812 = vsyncpa [#allocation4], 1 }
 0x255   :  { %814 = vsyncpa [#allocation4 + $0x1], 1 }
 0x256   :  { %815 = vsyncpa [#allocation15], 1 }
 0x257   :  { %817 = vsyncpa [#allocation15 + $0x1], 1 }

// kernel: tpu_custom_call.1
= control target key start
LH: loop header
LB: loop body
LE: loop exit
PB: predicated region body
PF: predicated region fallthrough
CT: control target
= control target key end

     0   :  { %s1869_s0 = inlined_call_operand.hbm [shape: bf16[2,8,32], index: 0, kind: input, shape index: {}]   ;;  %s1870_s1 = inlined_call_operand.hbm [shape: bf16[2,32,32], index: 1, kind: input, shape index: {}]   ;;  %s1871_s2 = inlined_call_operand.hbm [shape: f32[2,1,32], index: 2, kind: input, shape index: {}]   ;;  %s1872_s3 = inlined_call_operand.hbm [shape: bf16[32,128], index: 3, kind: input, shape index: {}]   ;;  %s1873_s4 = inlined_call_operand.vmem [shape: f32[1,128], index: 4, kind: input, shape index: {}]   ;;  %s1874_s5 = inlined_call_operand.hbm [shape: bf16[128,128], index: 5, kind: input, shape index: {}]   ;;  %s1875_s6 = inlined_call_operand.hbm [shape: bf16[2,32,128], index: 6, kind: input, shape index: {}]   ;;  %s1876_s7 = inlined_call_operand.vmem [shape: f32[2,1,128], index: 7, kind: input, shape index: {}]   ;;  %s1877_s8 = inlined_call_operand.hbm [shape: bf16[2,8,32], index: 8, kind: output, shape index: {0}]   ;;  %s1878_s9 = inlined_call_operand.hbm [shape: f32[2,8,128], index: 9, kind: output, shape index: {1}]  }
   0x1   :  { %1895 = sst [smem:[#allocation29_spill]] %s1869_s0 }
   0x2   :  { %1896 = sst [smem:[#allocation30_spill]] %s1870_s1 }
   0x3   :  { %1897 = sst [smem:[#allocation31_spill]] %s1872_s3 }
   0x4   :  { %1898 = sst [smem:[#allocation32_spill]] %s1874_s5 }
   0x5   :  { %1899 = sst [smem:[#allocation33_spill]] %s1877_s8 }
   0x6   :  { %1900 = sst [smem:[#allocation34_spill]] %s1878_s9 }
   0x7   :  { %15 = vsyncpa [#allocation3], 0 }
   0x8   :  { %17 = vsyncpa [#allocation3 + $0x1], 0 }
   0x9   :  { %18 = vsyncpa [#allocation6], 0 }
   0xa   :  { %20 = vsyncpa [#allocation6 + $0x1], 0 }
   0xb   :  { %21 = vsyncpa [#allocation9], 0 }
   0xc   :  { %22 = vsyncpa [#allocation12], 0 }
   0xd   :  { %24 = vsyncpa [#allocation12 + $0x1], 0 }
   0xe   :  { %25 = vsyncpa [#allocation4], 0 }
   0xf   :  { %27 = vsyncpa [#allocation4 + $0x1], 0 }
  0x10   :  { %28 = vsyncpa [#allocation15], 0 }
  0x11   :  { %30 = vsyncpa [#allocation15 + $0x1], 0  ;;  %s1611_s30 = smov 0   ;;  %s1613_s10 = smov 0  }
  0x12   :  { %s1615_s11 = smov 0   ;;  %s1617_s12 = smov 0  }
  0x13   :  { %s1619_s13 = smov 0   ;;  %s1621_s14 = smov 0  }
  0x14 LB: > { %1901 = sst [smem:[#allocation22_spill]] %s1535_s30  ;;  %s1642_s15 = sadd.s32 4294967295, %s1555_s14   ;;  %s1555_s14 = sphi %s1621_s14, %s36_s14   ;;  %s1551_s13 = sphi %s1619_s13, %s1935_s13   ;;  %s1547_s12 = sphi %s1617_s12, %s1934_s12   ;;  %s1543_s11 = sphi %s1615_s11, %s1930_s11   ;;  %s1539_s10 = sphi %s1613_s10, %s1933_s10   ;;  %s1535_s30 = sphi %s1611_s30, %s1932_s30  }
  0x15   : > { %1902 = sst [smem:[#allocation23_spill]] %s1543_s11  ;;  %s1029_s16 = sadd.s32 4294967294, %s1555_s14  }
  0x16   : > { %1903 = sst [smem:[#allocation24_spill]] %s1555_s14  ;;  %p64_p0 = scmp.ne.s32.totalorder %s1543_s11, %s1539_s10 }
  0x17   : > { %p70_p1 = scmp.ne.s32.totalorder %s1539_s10, %s1535_s30  ;;  %p71_p2 = scmp.eq.s32.totalorder %s1642_s15, 0 }
  0x18   : > { %p263_p3 = scmp.eq.s32.totalorder %s1642_s15, 1  ;;  %p269_p4 = scmp.eq.s32.totalorder %s1029_s16, 1 }
  0x19   : > { %p1654_p5 = por %p71_p2, %p70_p1  ;;  %p1030_p6 = scmp.ge.s32.totalorder %s1555_s14, 1 }
  0x1a   : > { %p1662_p7 = por %p263_p3, %p64_p0  ;;  %p1666_p8 = por %p269_p4, %p70_p1 }
  0x1b   : > { %p304_p9 = scmp.lt.s32.totalorder %s1555_s14, 3  ;;  %s1909_s3 = sld [smem:[#allocation31_spill]] }
  0x1c   : > { %s1905_s19 = scalar_select %p1662_p7, 1, 0 }
  0x1d   : > { %s1907_s20 = scalar_select %p1666_p8, 1, 0 }
  0x1e   : > { %1906 = sst [smem:[#allocation25_spill]] %s1905_s19  ;;  %p1674_p10 = pnand %p1030_p6, %p304_p9 }
  0x1f   : > { %1908 = sst [smem:[#allocation26_spill]] %s1907_s20  ;;  %s1557_s25 = smov [#allocation8]  }
  0x20   : > { %s317_s26 = sshll.u32 %s1557_s25, 4  ;;  %p1153_p11 = pneg %p1674_p10  ;;  %s318_s26 = int_to_ptr.vmem [resolvable:$true] %s317_s26 }
  0x21   : > { %s315_s23 = sshll.u32 %s1909_s3, 4  ;;  %p1033_p12 = scmp.ge.s32.totalorder %s1555_s14, 2  ;;  %s316_s23 = int_to_ptr.hbm [resolvable:$true] %s315_s23 }
  0x22   : > { %p1683_p13 = pnand %p1153_p11, %p71_p2  ;;  %p65_p1 = scmp.eq.s32.totalorder %s1555_s14, 0 }
  0x23   : > { %s48_s28 = sadd.s32 1, %s1551_s13  ;;  %s1879_s29 = smov 64  }
  0x24   : > { %s1881_s16 = smov 4   ;;  %p50_p3 = scmp.ge.s32.totalorder %s48_s28, 2 }
  0x25   : > { %1156 = dma.hbm_to_vmem [thread:$0]  (!%p1683_p13), %s316_s23, 256, %s318_s26, [#allocation9], %s1879_s29, %s1879_s29, %s1881_s16  }
  0x26   : > { %p66_p4 = por %p65_p1, %p64_p0  ;;  %p1182_p6 = scmp.lt.s32.totalorder %s1555_s14, 2 }
  0x27   : > { %s1699_s21 = sand.u32 1, %s1543_s11   ;;  %s1937_s28 = smov (%p50_p3, %s48_s28), 0 }
  0x28   : > { %1912 = sst [smem:[#allocation27_spill]] %s1937_s28  ;;  %p1703_p9 = pnand %p1182_p6, %p66_p4 }
  0x29   : > { %s368_s25 = sand.u32 1, %s1555_s14   ;;  %s52_s17 = ssub.s32 %s1551_s13, %s1937_s28 }
  0x2a   : > { %p55_p11 = scmp.eq.s32.totalorder %s52_s17, 0  ;;  %s1892_s23 = sshll.u32 %s1699_s21, 4 }
  0x2b   : > { %s1893_s26 = sshll.u32 %s1551_s13, 4  ;;  %s1914_s29 = sadd.s32 1, %s1543_s11 }
  0x2c   : > { %s1715_s16 = scalar_select %p55_p11, %s1543_s11, %s1914_s29  }
  0x2d   : > { %s1916_s1 = sld [smem:[#allocation30_spill]]  ;;  %s372_s8 = scalar_lea.vmem [#allocation5], %s1892_s23 }
  0x2e   : > { %1915 = sst [smem:[#allocation28_spill]] %s1715_s16  ;;  %s380_s19 = sshll.u32 %s372_s8, 4  ;;  %s381_s19 = int_to_ptr.vmem [resolvable:$true] %s380_s19 }
  0x2f   : > { %s369_s17 = scalar_lea.sflag [#allocation6], %s368_s25  ;;  %s1917_s28 = smov 4  }
  0x30   : > { %s1918_s14 = smov 64   ;;  %s1919_s5 = sld [smem:[#allocation32_spill]] }
  0x31   : > { %s1034_s8 = sshll.u32 %s1699_s21, 2  ;;  %s1035_s25 = sshll.u32 %s1551_s13, 2 }
  0x32   : > { %s1920_s0 = sld [smem:[#allocation29_spill]]  ;;  %s352_s23 = scalar_lea.vmem [#allocation2], %s1034_s8 }
  0x33   : > { %s377_s30 = scalar_lea.hbm %s1916_s1, %s1893_s26  ;;  %s361_s26 = sshll.u32 %s352_s23, 4  ;;  %s362_s26 = int_to_ptr.vmem [resolvable:$true] %s361_s26 }
  0x34   : > { %s378_s9 = sshll.u32 %s377_s30, 4  ;;  %s1560_s30 = smov [#allocation10]   ;;  %s379_s9 = int_to_ptr.hbm [resolvable:$true] %s378_s9 }
  0x35   : > { %1166 = dma.hbm_to_vmem [thread:$0]  (!%p1703_p9), %s379_s9, 256, %s381_s19, %s369_s17, %s1918_s14, %s1918_s14, %s1917_s28  }
  0x36   : > { %s332_s3 = sshll.u32 %s1919_s5, 4  ;;  %s334_s20 = sshll.u32 %s1560_s30, 4  ;;  %s333_s3 = int_to_ptr.hbm [resolvable:$true] %s332_s3  ;;  %s335_s20 = int_to_ptr.vmem [resolvable:$true] %s334_s20 }
  0x37   : > { %1159 = dma.hbm_to_vmem [thread:$0]  (!%p1683_p13), %s333_s3, 1024, %s335_s20, [#allocation9], %s1918_s14, %s1918_s14, %s1917_s28  }
  0x38   : > { %s357_s16 = scalar_lea.hbm %s1920_s0, %s1035_s25  ;;  %s349_s27 = scalar_lea.sflag [#allocation3], %s1699_s21 }
  0x39   : > { %s359_s29 = sshll.u32 %s357_s16, 4  ;;  %s396_s20 = scalar_lea.hbm %s1871_s2, %s1551_s13  ;;  %s360_s29 = int_to_ptr.hbm [resolvable:$true] %s359_s29 }
  0x3a   : > { %1163 = dma.hbm_to_vmem [thread:$0]  (!%p1703_p9), %s360_s29, 64, %s362_s26, %s349_s27  }
  0x3b   : > { %s398_s1 = sshll.u32 %s396_s20, 4  ;;  %s393_s5 = scalar_lea.vmem [#allocation7], %s1699_s21  ;;  %s399_s1 = int_to_ptr.hbm [resolvable:$true] %s398_s1 }
  0x3c   : > { %s400_s9 = sshll.u32 %s393_s5, 4  ;;  %s1921_s8 = sshll.u32 %s1551_s13, 4  ;;  %s401_s9 = int_to_ptr.vmem [resolvable:$true] %s400_s9 }
  0x3d   : > { %1169 = dma.hbm_to_vmem [thread:$0]  (!%p1703_p9), %s399_s1, 16, %s401_s9, %s369_s17  }
  0x3e   : > { %s416_s19 = scalar_lea.hbm %s1875_s6, %s1921_s8  ;;  %s1922_s16 = sshll.u32 %s1699_s21, 4 }
  0x3f   : > { %s411_s0 = scalar_lea.vmem [#allocation11], %s1922_s16  ;;  %s417_s26 = sshll.u32 %s416_s19, 4  ;;  %s418_s26 = int_to_ptr.hbm [resolvable:$true] %s417_s26 }
  0x40   : > { %s419_s11 = sshll.u32 %s411_s0, 4  ;;  %s408_s29 = scalar_lea.sflag [#allocation12], %s1699_s21  ;;  %s420_s11 = int_to_ptr.vmem [resolvable:$true] %s419_s11 }
  0x41   : > { %1172 = dma.hbm_to_vmem [thread:$0]  (!%p1703_p9), %s418_s26, 256, %s420_s11, %s408_s29, %s1918_s14, %s1918_s14, %s1917_s28  }
  0x42   : > { %437 = sbr.rel (%p1674_p10) target bundleno = 547 (0x223), region = 52  ;;  %s1768_s1 = sand.u32 (!%p1674_p10), 1, %s1539_s10  }
  0x43   : > { %s1043_s0 = sshll.u32 (!%p1674_p10), %s1768_s1, 2  ;;  %s440_s5 = scalar_lea.sflag (!%p1674_p10), [#allocation3], %s1768_s1 }
  0x44   : > { %s443_s17 = scalar_lea.vmem (!%p1674_p10), [#allocation2], %s1043_s0 }
  0x47   : > { %1510 = dma.done.wait (%p1654_p5), %s440_s5, 64  }
  0x48   : > { %1512 = vsyncadd (%p1654_p5), %s440_s5, 4294967232  ;;  %s449_s11 = sand.u32 1, %s1642_s15   ;;  %s1044_s14 = sshll.u32 %s1768_s1, 4 }
  0x49   : > { %s450_s24 = scalar_lea.sflag [#allocation6], %s449_s11  ;;  %s453_s28 = scalar_lea.vmem [#allocation5], %s1044_s14 }
  0x4a   : > { %1514 = dma.done.wait (%p1654_p5), %s450_s24, 272  }
  0x4b   : > { %1516 = vsyncadd (%p1654_p5), %s450_s24, 4294967024  ;;  %s462_s21 = scalar_lea.vmem [#allocation7], %s1768_s1 }
  0x4c   : > { %1518 = dma.done.wait (%p71_p2), [#allocation9], 1280  }
  0x4d   : > { %1520 = vsyncadd (%p71_p2), [#allocation9], 4294966016  ;;  %s479_s22 = scalar_lea.sflag [#allocation12], %s1768_s1  ;;  %s482_s27 = scalar_lea.vmem [#allocation11], %s1044_s14 }
  0x4e   : > { %1522 = dma.done.wait (%p1654_p5), %s479_s22, 256  }
  0x4f   : > { %1524 = vsyncadd (%p1654_p5), %s479_s22, 4294967040  ;;  %v1120_v0 = vld [vmem:[%s453_s28 + $0x8] sm:$0xff]  ;;  %v1119_v1 = vld [vmem:[%s453_s28] sm:$0xff]  ;;  %vm566_vm0 = vcmask 261120   ;;  %vm784_vm5 = vcmask 257024   ;;  %s532_s15 = scalar_lea.vmem [#allocation13], %s1043_s0 }
  0x50   : > { %576 = vmatpush.bf16.msra.mxu0 %v1120_v0  ;;  %v544_v2 = vld [vmem:[%s443_s17] sm:$0xf]  ;;  %v1122_v3 = vld [vmem:[#allocation8 + $0x8] sm:$0xff]  ;;  %v1121_v5 = vld [vmem:[#allocation8] sm:$0xff]  ;;  %p540_p0 = scmp.lt.s32.totalorder %s1547_s12, 1  ;;  %s1113_s25 = sshll.u32 %s1547_s12, 2 }
  0x51   : > { %v1132_v4 = vld [vmem:[%s482_s27 + $0x8] sm:$0xff]  ;;  %634 = vmatpush.bf16.msra.mxu1 %v1122_v3  ;;  %v1131_v6 = vld [vmem:[%s482_s27] sm:$0xff]  ;;  %v545_v26 = vunpack.c.l.bf16 %v544_v2  ;;  %s1924_s26 = sld [smem:[#allocation33_spill]]  ;;  %s806_s0 = sshll.u32 %s532_s15, 4  ;;  %s807_s0 = int_to_ptr.vmem [resolvable:$true] %s806_s0 }
  0x52   : > { %685 = vmatpush.bf16.msra.mxu2 %v1132_v4  ;;  %v1238_v7 = vld [vmem:[%s462_s21] ss:$0 sm:$0xff]  ;;  %v1130_v11 = vld [vmem:[#allocation10 + $0x38] sm:$0xff]  ;;  %v1129_v12 = vld [vmem:[#allocation10 + $0x30] sm:$0xff]  ;;  %s1801_s18 = scalar_select %p540_p0, %s1547_s12, 1 }
  0x53   : > { %740 = vmatpush.bf16.msra.mxu3 %v1130_v11  ;;  %v1128_v15 = vld [vmem:[#allocation10 + $0x28] sm:$0xff]  ;;  %v1127_v17 = vld [vmem:[#allocation10 + $0x20] sm:$0xff]  ;;  %v1126_v18 = vld [vmem:[#allocation10 + $0x18] sm:$0xff]  ;;  %s788_s17 = scalar_lea.sflag [#allocation4], %s1768_s1 }
  0x54   : > { %577 = vmatpush.bf16.msra.mxu0 %v1119_v1  ;;  %v1125_v22 = vld [vmem:[#allocation10 + $0x10] sm:$0xff]  ;;  %s542_s20 = scalar_lea.vmem %s1876_s7, %s1801_s18  ;;  %v1124_v36 = vld [vmem:[#allocation10 + $0x8] sm:$0xff]  ;;  %v1123_v37 = vld [vmem:[#allocation10] sm:$0xff] }
  0x55   : > { %635 = vmatpush.bf16.msra.mxu1 %v1121_v5  ;;  %v1239_v38 = vld [vmem:[%s1873_s4] ss:$0 sm:$0xff] }
  0x56   : > { %686 = vmatpush.bf16.msra.mxu2 %v1131_v6 }
  0x57   : > { %1058 = vmatmul.msk.bf16.vlgmr.msra.gmra.mxu0 %vm566_vm0, %v544_v2  ;;  %741 = vmatpush.bf16.msra.mxu3 %v1129_v12  ;;  %s804_s29 = scalar_lea.hbm %s1924_s26, %s1113_s25  ;;  %s1449_s21 = scalar_lea.hbm %s1924_s26, 8 }
  0x58   : > { %s808_s5 = sshll.u32 %s804_s29, 4  ;;  %s809_s5 = int_to_ptr.hbm [resolvable:$true] %s808_s5 }
  0x59   : > { %s1443_s11 = sshra.s32 %s809_s5, 4  ;;  %s1444_s11 = int_to_ptr.hbm [resolvable:$true] %s1443_s11 }
  0x5a   : > { %s1445_s14 = scalar_lea.hbm %s1444_s11, 4  ;;  %p1450_p13 = scmp.lt.s32.totalorder %s1444_s11, %s1924_s26 }
  0x5b   : > { %742 = vmatpush.bf16.msra.mxu3 %v1128_v15  ;;  %p1446_p2 = scmp.ne.s32.totalorder %s1444_s11, %s1445_s14  ;;  %p1451_p1 = scmp.lt.s32.totalorder %s1449_s21, %s1445_s14 }
  0x5d   : > { %p1447_p5 = pnand %p1446_p2, %p1662_p7  ;;  %p1452_p3 = por %p1451_p1, %p1450_p13 }
  0x5f   : > { %743 = vmatpush.bf16.msra.mxu3 %v1127_v17  ;;  %p1448_p10 = pneg %p1447_p5 }
  0x61   : > { %p1453_p4 = pnand %p1452_p3, %p1448_p10 }
  0x63   : > { %744 = vmatpush.bf16.msra.mxu3 %v1126_v18 }
  0x67   : > { %745 = vmatpush.bf16.msra.mxu3 %v1125_v22 }
  0x6b   : > { %746 = vmatpush.bf16.msra.mxu3 %v1124_v36 }
  0x6f   : > { %747 = vmatpush.bf16.msra.mxu3 %v1123_v37 }
  0xd4   : > { %v579_v8 = vpop.f32.mrf.mxu0 }
  0xd5   : > { %v580_v9 = vadd.f32 %v1238_v7, %v579_v8 }
  0xd7   : > { %v1059_v10 = vmul.f32 -1.442695, %v580_v9 }
  0xd9   : > { %1241 = vpow2.f32 %v1059_v10 }
  0xdc   : > { %v581_v13 = vpop.f32.mrf.mxu0 }
  0xdf   : > { %v1242_v14 = vpop.eup %1241 }
  0xe0   : > { %v586_v16 = vadd.f32 1.0, %v1242_v14 }
  0xe2   : > { %1243 = vrcp.f32 %v586_v16  ;;  %v598_v23 = vand.u32 2147483648, %v586_v16  ;;  %v596_v25 = vand.u32 2147483647, %v586_v16  ;;  %vm592_vm2 = vweird.f32 %v586_v16 }
  0xe4   : > { %v599_v28 = vor.u32 1.1754944e-38, %v598_v23  ;;  %vm597_vm4 = vcmp.eq.f32.partialorder %v596_v25, 8.507059e+37 }
  0xe8   : > { %v1244_v19 = vpop.eup %1243 }
  0xe9   : > { %v588_v20 = vmul.f32 %v1244_v19, %v586_v16  ;;  %vm593_vm1 = vweird.f32 %v1244_v19 }
  0xea   : > { %vm594_vm3 = vmor %vm592_vm2, %vm593_vm1 }
  0xeb   : > { %v589_v21 = vsub.f32 1.0, %v588_v20 }
  0xed   : > { %v590_v24 = vmul.f32 %v1244_v19, %v589_v21 }
  0xef   : > { %v591_v27 = vadd.f32 %v1244_v19, %v590_v24 }
  0xf1   : > { %v595_v29 = vsel %vm594_vm3, %v1244_v19, %v591_v27 }
  0xf2   : > { %v600_v30 = vsel %vm597_vm4, %v599_v28, %v595_v29 }
  0xf3   : > { %v602_v31 = vmul.f32 %v600_v30, %v545_v26  ;;  %v783_v32 = vpack.c.bf16 %v600_v30, %v600_v30 }
  0xf5   : > { %v604_v33 = vpack.c.bf16 %v602_v31, %v602_v31  ;;  %v603_v34 = vsub.f32 %v545_v26, %v602_v31  ;;  %785 = vst.msk [vmem:[%s532_s15] sm:$0xf] %vm784_vm5, %v783_v32 }
  0xf7   : > { %1068 = vmatmul.msk.bf16.vlgmr.msra.gmra.mxu1 %vm566_vm0, %v604_v33  ;;  %v659_v35 = vpack.c.bf16 %v603_v34, %v603_v34 }
  0xf9   : > { %1077 = vmatmul.msk.bf16.vlgmr.msra.gmra.mxu2 %vm566_vm0, %v659_v35 }
 0x174   : > { %v637_v39 = vpop.f32.mrf.mxu1 }
 0x175   : > { %v638_v40 = vadd.f32 %v1239_v38, %v637_v39 }
 0x177   : > { %v641_v41 = vmax.f32 %v638_v40, 0.0 }
 0x179   : > { %v642_v42 = vpack.c.bf16 %v641_v41, %v641_v41 }
 0x17b   : > { %748 = vmatmul.bf16.vlgmr.msra.gmra.mxu3 %v642_v42 }
 0x17c   : > { %v639_v43 = vpop.f32.mrf.mxu1  ;;  %v688_v44 = vpop.f32.mrf.mxu2 }
 0x184   : > { %v690_v45 = vpop.f32.mrf.mxu2 }
 0x185   : > { %1456 = shalt.err (!%p1453_p4)
}
 0x186   : > { %1149 = dma.vmem_to_hbm [thread:$0]  (%p1662_p7), %s807_s0, 64, %s809_s5, %s788_s17   ;;  %v1240_v46 = vld [vmem:[%s542_s20] ss:$0 sm:$0xff]  ;;  %v758_v54 = vlaneseq }
 0x187   : > { %s1049_s30 = sshll.u32 %s1768_s1, 3  ;;  %s1114_s9 = sshll.u32 %s1547_s12, 3 }
 0x188   : > { %v759_v56 = vand.u32 127, %v758_v54  ;;  %s1925_s8 = sld [smem:[#allocation34_spill]]  ;;  %s539_s19 = scalar_lea.vmem [#allocation14], %s1049_s30 }
 0x189   : > { %s821_s16 = sshll.u32 %s539_s19, 4  ;;  %s793_s12 = scalar_lea.sflag [#allocation15], %s1768_s1  ;;  %s822_s16 = int_to_ptr.vmem [resolvable:$true] %s821_s16 }
 0x18a   : > { %vm760_vm6 = vcmp.ge.s32.totalorder %v759_v56, 4  ;;  %vm761_vm7 = vcmp.lt.s32.totalorder %v759_v56, 12 }
 0x18b   : > { %vm762_vm9 = vmand %vm760_vm6, %vm761_vm7 }
 0x18e   : > { %s819_s25 = scalar_lea.hbm %s1925_s8, %s1114_s9  ;;  %s1477_s14 = scalar_lea.hbm %s1925_s8, 16 }
 0x18f   : > { %s823_s29 = sshll.u32 %s819_s25, 4  ;;  %s824_s29 = int_to_ptr.hbm [resolvable:$true] %s823_s29 }
 0x190   : > { %s1471_s0 = sshra.s32 %s824_s29, 4  ;;  %s1472_s0 = int_to_ptr.hbm [resolvable:$true] %s1471_s0 }
 0x191   : > { %s1473_s5 = scalar_lea.hbm %s1472_s0, 8  ;;  %p1478_p0 = scmp.lt.s32.totalorder %s1472_s0, %s1925_s8 }
 0x192   : > { %p1474_p6 = scmp.ne.s32.totalorder %s1472_s0, %s1473_s5  ;;  %p1479_p2 = scmp.lt.s32.totalorder %s1477_s14, %s1473_s5 }
 0x194   : > { %p1475_p9 = pnand %p1474_p6, %p1662_p7  ;;  %p1480_p5 = por %p1479_p2, %p1478_p0 }
 0x196   : > { %p1476_p11 = pneg %p1475_p9 }
 0x198   : > { %p1481_p10 = pnand %p1480_p5, %p1476_p11 }
 0x1fe   : > { %v749_v47 = vpop.f32.mrf.mxu3 }
 0x1ff   : > { %v750_v48 = vadd.f32 %v749_v47, %v688_v44 }
 0x201   : > { %v757_v49 = vadd.f32 %v1240_v46, %v750_v48 }
 0x203   : > { %v1110_v50 = vmul.f32 -1.442695, %v757_v49 }
 0x205   : > { %1245 = vpow2.f32 %v1110_v50 }
 0x206   : > { %v751_v51 = vpop.f32.mrf.mxu3 }
 0x20b   : > { %v1246_v52 = vpop.eup %1245 }
 0x20c   : > { %v766_v53 = vadd.f32 1.0, %v1246_v52 }
 0x20e   : > { %1247 = vrcp.f32 %v766_v53  ;;  %v778_v59 = vand.u32 2147483648, %v766_v53  ;;  %v776_v61 = vand.u32 2147483647, %v766_v53  ;;  %vm772_vm10 = vweird.f32 %v766_v53 }
 0x210   : > { %v779_v63 = vor.u32 1.1754944e-38, %v778_v59  ;;  %vm777_vm12 = vcmp.eq.f32.partialorder %v776_v61, 8.507059e+37 }
 0x214   : > { %v1248_v55 = vpop.eup %1247 }
 0x215   : > { %v768_v57 = vmul.f32 %v1248_v55, %v766_v53  ;;  %vm773_vm8 = vweird.f32 %v1248_v55 }
 0x216   : > { %vm774_vm11 = vmor %vm772_vm10, %vm773_vm8 }
 0x217   : > { %v769_v58 = vsub.f32 1.0, %v768_v57 }
 0x219   : > { %v770_v60 = vmul.f32 %v1248_v55, %v769_v58 }
 0x21b   : > { %v771_v62 = vadd.f32 %v1248_v55, %v770_v60 }
 0x21d   : > { %v775_v0 = vsel %vm774_vm11, %v1248_v55, %v771_v62 }
 0x21e   : > { %v780_v1 = vsel %vm777_vm12, %v779_v63, %v775_v0 }
 0x21f   : > { %v782_v2 = vsel %vm762_vm9, %v780_v1, %v757_v49 }
 0x220   : > { %786 = vst [vmem:[%s539_s19] sm:$0xff] %v782_v2 }
 0x221   : > { %1484 = shalt.err (!%p1481_p10)
}
 0x222   : > { %1150 = dma.vmem_to_hbm [thread:$0]  (%p1662_p7), %s822_s16, 128, %s824_s29, %s793_s12  }
 0x223 PF: > { %s1926_s1 = sld [smem:[#allocation22_spill]]  ;;  %p1174_p13 = pnand %p1033_p12, %p1666_p8 }
 0x224   : > { %s1928_s22 = sld [smem:[#allocation24_spill]] }
 0x225   : > { %p1175_p1 = pneg %p1174_p13 }
 0x229   : > { %s835_s27 = sand.u32 1, %s1926_s1  }
 0x22a   : > { %s836_s15 = scalar_lea.sflag [#allocation4], %s835_s27 }
 0x22b   : > { %1526 = dma.done.wait (%p1175_p1), %s836_s15, 64  }
 0x22c   : > { %1528 = vsyncadd (%p1175_p1), %s836_s15, 4294967232  ;;  %s846_s3 = scalar_lea.sflag [#allocation15], %s835_s27 }
 0x22d   : > { %1530 = dma.done.wait (%p1175_p1), %s846_s3, 128  }
 0x22e   : > { %1532 = vsyncadd (%p1175_p1), %s846_s3, 4294967168  ;;  %s36_s14 = sadd.s32 1, %s1928_s22   ;;  %s1929_s23 = sld [smem:[#allocation23_spill]] }
 0x22f   : > { %p33_p3 = scmp.ge.s32.totalorder %s36_s14, 4   ;;  %s1930_s11 = sld [smem:[#allocation28_spill]] }
 0x230   : > { %s1931_s9 = sld [smem:[#allocation27_spill]]  ;;  %s1932_s30 = smov %s1539_s10 }
 0x231   : > { %s1934_s12 = smov %s1551_s13 }
 0x232   :  { %35 = sbr.rel (!%p33_p3) target bundleno = 20 (0x14), region = 162 }
 0x234   : > { %s1933_s10 = smov %s1929_s23 }
 0x236   : > { %s1935_s13 = smov %s1931_s9 }
 0x237   :  { %852 = vsyncpa [#allocation3], 1 }
 0x238   :  { %854 = vsyncpa [#allocation3 + $0x1], 1 }
 0x239   :  { %855 = vsyncpa [#allocation6], 1 }
 0x23a   :  { %857 = vsyncpa [#allocation6 + $0x1], 1 }
 0x23b   :  { %858 = vsyncpa [#allocation9], 1 }
 0x23c   :  { %859 = vsyncpa [#allocation12], 1 }
 0x23d   :  { %861 = vsyncpa [#allocation12 + $0x1], 1 }
 0x23e   :  { %862 = vsyncpa [#allocation4], 1 }
 0x23f   :  { %864 = vsyncpa [#allocation4 + $0x1], 1 }
 0x240   :  { %865 = vsyncpa [#allocation15], 1 }
 0x241   :  { %867 = vsyncpa [#allocation15 + $0x1], 1 }

</bundles_post_ra>
